<compile_context>
chip_gen: v6e
topology: v6e:2x2x1
jax: 0.10.0
libtpu: 0.0.40
codegen_flags: <defaults>
</compile_context>

<pallas_src>
import functools

import jax
import jax.numpy as jnp
from jax.experimental import pallas as pl
from jax.experimental.pallas import tpu as pltpu


def _make_rnn_kernel(nlayers, S, B, E, H):
    """Fused kernel: nlayers outer passes, each a wavefront over the nlayers-deep LSTM."""
    L = nlayers
    n_passes = nlayers          # RNN.forward re-applies the stack self.nlayers times
    LH = L * H
    GW = 4 * LH                 # fused gate width: [I | F | O | Gtanh], layer-major
    n_wave = S + L - 1          # wavefront steps per pass

    def kernel(x_ref, wih0_ref, wrec_ref, bias_ref, h0_ref, c0_ref,
               y_ref, hN_ref, cN_ref, pre_s, seq_s):
        wrec = wrec_ref[...]        # (LH, GW) block-structured recurrent/stack weight
        bias = bias_ref[...]        # (1, GW)  both layers' biases (sigmoid cols pre-halved)
        wih0 = wih0_ref[...]        # (E, GW)  layer-0 input weight in fused columns

        # Packed states: lanes [l*H:(l+1)*H] belong to layer l.
        h = h0_ref[...].astype(jnp.float32)     # (B, LH)
        c = c0_ref[...].astype(jnp.float32)     # (B, LH)

        # Lane index, used only on wavefront ramp-up / ramp-down steps (hoisted once).
        lane = jax.lax.broadcasted_iota(jnp.int32, (B, LH), 1)

        for p in range(n_passes):               # outer re-application in RNN.forward
            # Hoisted layer-0 input matmul for the whole sequence (+ all biases),
            # parked in VMEM so the per-step read is a cheap 2-sublane load.
            if p == 0:
                xin = x_ref[...].astype(jnp.float32)    # (S*B, E)
            else:
                xin = seq_s[...]                         # (S*B, H): previous pass output
            pre_s[...] = jnp.dot(xin, wih0,
                                 preferred_element_type=jnp.float32) + bias

            dst = y_ref if p == n_passes - 1 else seq_s  # where top-layer outputs go

            for k in range(n_wave):             # wavefront: layer l handles time k - l
                lo = max(0, k - S + 1)          # lowest / highest active layer
                hi = min(L - 1, k)

                if k < S:                        # layer 0 active: add its input row
                    pre_row = pre_s[pl.ds(k * B, B), :]          # (B, GW)
                else:                            # ramp-down: biases only
                    pre_row = bias

                # One fused MXU push: the h_l row block drives both W_hh(l) and W_ih(l+1).
                g_lin = pre_row + jnp.dot(h, wrec,
                                          preferred_element_type=jnp.float32)  # (B, GW)

                # Single full-width tanh; sigmoid = 0.5*tanh(x/2)+0.5 with the 1/2
                # pre-folded into the sigmoid-gate weight/bias columns.
                t_all = jnp.tanh(g_lin)
                sig = 0.5 * t_all[:, 0:3 * LH] + 0.5
                i_a = sig[:, 0 * LH:1 * LH]
                f_a = sig[:, 1 * LH:2 * LH]
                o_a = sig[:, 2 * LH:3 * LH]
                g_a = t_all[:, 3 * LH:4 * LH]

                c_new = f_a * c + i_a * g_a              # all layers at once (VPU)
                h_new = o_a * jnp.tanh(c_new)            # one more EUP push

                if lo == 0 and hi == L - 1:              # steady state: all layers active
                    h, c = h_new, c_new
                else:                                    # ramp: commit only active layers
                    m = (lane >= lo * H) & (lane < (hi + 1) * H)
                    h = jnp.where(m, h_new, h)
                    c = jnp.where(m, c_new, c)

                if k >= L - 1:                           # top layer just emitted time k-(L-1)
                    t_out = k - (L - 1)
                    dst[pl.ds(t_out * B, B), :] = (
                        h[:, (L - 1) * H:L * H].astype(dst.dtype))

            # self.drop(output): identity (dropout = 0.0 in this config)
            # TODO(synk): train-mode dropout (p > 0) between passes is not implemented.

        hN_ref[...] = h.astype(hN_ref.dtype)
        cN_ref[...] = c.astype(cN_ref.dtype)

    return kernel


def pack_params(params, nlayers, E, H):
    """Build fused kernel weights from per-layer (W_ih^T, W_hh^T, b_ih + b_hh).

    Fused gate-column layout (width 4*L*H): [ I | F | O | Gtanh ], each block L*H wide,
    layer-major inside a block.  Sigmoid-gate columns (I, F, O) are pre-scaled by 1/2 so
    the kernel evaluates sigmoid as 0.5*tanh(x/2)+0.5 with a single full-width tanh.
    Done once at parameter-load time (not inside the hot jitted wrapper).
    """
    L = nlayers
    LH = L * H
    GW = 4 * LH

    def cols(block, l):
        return slice(block * LH + l * H, block * LH + (l + 1) * H)

    def place(dst, rows, src4h, l):
        # src4h columns are in PyTorch gate order [i | f | g | o].
        dst = dst.at[rows, cols(0, l)].set(0.5 * src4h[..., 0 * H:1 * H])   # i (sigmoid)
        dst = dst.at[rows, cols(1, l)].set(0.5 * src4h[..., 1 * H:2 * H])   # f (sigmoid)
        dst = dst.at[rows, cols(3, l)].set(src4h[..., 2 * H:3 * H])         # g (tanh)
        dst = dst.at[rows, cols(2, l)].set(0.5 * src4h[..., 3 * H:4 * H])   # o (sigmoid)
        return dst

    wih0_fused = place(jnp.zeros((E, GW), jnp.float32), slice(None), params[0][0], 0)

    bias_fused = jnp.zeros((1, GW), jnp.float32)
    wrec_fused = jnp.zeros((LH, GW), jnp.float32)
    for l in range(L):
        wih_t, whh_t, b = params[l]
        bias_fused = place(bias_fused, slice(None), b, l)
        rows_l = slice(l * H, (l + 1) * H)
        wrec_fused = place(wrec_fused, rows_l, whh_t, l)          # h_l -> layer-l gates
        if l + 1 < L:
            # In the wavefront, layer l's current h IS layer (l+1)'s input at that time.
            wrec_fused = place(wrec_fused, rows_l, params[l + 1][0], l + 1)
    return wih0_fused, wrec_fused, bias_fused


@functools.partial(jax.jit, static_argnames=("nlayers",))
def rnn_forward(x, hidden, packed, nlayers):
    """Mirrors RNN.forward. x:(B,S,E) batch_first, hidden=(h0,c0) each (nlayers,B,H)."""
    B, S, E = x.shape
    h0, c0 = hidden
    L = nlayers
    H = h0.shape[-1]
    assert E == H, "outer re-application in forward() requires input_size == hidden_size"
    wih0_fused, wrec_fused, bias_fused = packed

    # One boundary transpose: batch_first (B,S,E) -> time-major, flattened (S*B,E).
    x2d = jnp.transpose(x, (1, 0, 2)).reshape(S * B, E)
    # Pack per-layer states into the kernel's lane-major layout (B, L*H).
    h0p = jnp.transpose(h0, (1, 0, 2)).reshape(B, L * H)
    c0p = jnp.transpose(c0, (1, 0, 2)).reshape(B, L * H)

    kernel = _make_rnn_kernel(nlayers, S, B, E, H)
    y2d, hNp, cNp = pl.pallas_call(
        kernel,
        out_shape=(
            jax.ShapeDtypeStruct((S * B, H), x.dtype),
            jax.ShapeDtypeStruct((B, L * H), x.dtype),
            jax.ShapeDtypeStruct((B, L * H), x.dtype),
        ),
        in_specs=[pl.BlockSpec(memory_space=pltpu.MemorySpace.VMEM)] * 6,
        out_specs=(
            pl.BlockSpec(memory_space=pltpu.MemorySpace.VMEM),
            pl.BlockSpec(memory_space=pltpu.MemorySpace.VMEM),
            pl.BlockSpec(memory_space=pltpu.MemorySpace.VMEM),
        ),
        scratch_shapes=[
            pltpu.VMEM((S * B, 4 * L * H), jnp.float32),  # hoisted layer-0 pre-activations
            pltpu.VMEM((S * B, H), jnp.float32),          # pass-to-pass sequence buffer
        ],
    )(x2d, wih0_fused, wrec_fused, bias_fused, h0p, c0p)

    y = y2d.reshape(S, B, H).transpose(1, 0, 2)           # back to batch_first (B,S,H)
    hN = hNp.reshape(B, L, H).transpose(1, 0, 2)          # back to (L, B, H)
    cN = cNp.reshape(B, L, H).transpose(1, 0, 2)
    return y, (hN, cN)


def _reference_forward(x, hidden, params, nlayers):
    """Pure-JAX reference (lax.scan LSTM) for a sanity check, using the raw weights."""
    def cell(carry, x_t, wih_t, whh_t, bias):
        h, c = carry
        H = h.shape[-1]
        g = x_t @ wih_t + h @ whh_t + bias
        i = jax.nn.sigmoid(g[:, 0 * H:1 * H])
        f = jax.nn.sigmoid(g[:, 1 * H:2 * H])
        gg = jnp.tanh(g[:, 2 * H:3 * H])
        o = jax.nn.sigmoid(g[:, 3 * H:4 * H])
        c = f * c + i * gg
        h = o * jnp.tanh(c)
        return (h, c), h

    h, c = hidden
    output = x
    for _ in range(nlayers):
        layer_in = output
        h_next, c_next = [], []
        for l in range(nlayers):
            wih_t, whh_t, bias = params[l]
            x_tm = jnp.transpose(layer_in, (1, 0, 2))
            (hT, cT), y_tm = jax.lax.scan(
                lambda carry, xt: cell(carry, xt, wih_t, whh_t, bias),
                (h[l], c[l]), x_tm)
            layer_in = jnp.transpose(y_tm, (1, 0, 2))
            h_next.append(hT)
            c_next.append(cT)
        output = layer_in
        h = jnp.stack(h_next)
        c = jnp.stack(c_next)
    return output, (h, c)


if __name__ == "__main__":
    # Module config: model='LSTM', input_size=hidden_size=32, num_layers=2,
    # dropout=0.0, bidirection=False.
    B, S, E, H, NLAYERS = 2, 8, 32, 32, 2

    key = jax.random.PRNGKey(0)
    k_x, k_h, k_c, k_w = jax.random.split(key, 4)

    x = jax.random.normal(k_x, (B, S, E), dtype=jnp.float32)
    h0 = jax.random.normal(k_h, (NLAYERS, B, H), dtype=jnp.float32) * 0.1
    c0 = jax.random.normal(k_c, (NLAYERS, B, H), dtype=jnp.float32) * 0.1

    # Deterministic parameter init mimicking nn.LSTM's uniform(-1/sqrt(H), 1/sqrt(H)).
    bound = 1.0 / jnp.sqrt(jnp.float32(H))
    params = []
    wkeys = jax.random.split(k_w, NLAYERS * 4)
    for l in range(NLAYERS):
        in_sz = E if l == 0 else H
        kw1, kw2, kb1, kb2 = wkeys[4 * l:4 * l + 4]
        w_ih = jax.random.uniform(kw1, (4 * H, in_sz), jnp.float32, -bound, bound)
        w_hh = jax.random.uniform(kw2, (4 * H, H), jnp.float32, -bound, bound)
        b_ih = jax.random.uniform(kb1, (4 * H,), jnp.float32, -bound, bound)
        b_hh = jax.random.uniform(kb2, (4 * H,), jnp.float32, -bound, bound)
        # Pre-transpose; fold the two biases (they only ever add). PyTorch gate order [i|f|g|o].
        params.append((w_ih.T, w_hh.T, (b_ih + b_hh).reshape(1, 4 * H)))
    params = tuple(params)

    # One-time packing into the fused wavefront layout (sigmoid 1/2 folded in).
    packed = pack_params(params, NLAYERS, E, H)

    out, (hN, cN) = rnn_forward(x, (h0, c0), packed, nlayers=NLAYERS)
    jax.block_until_ready((out, hN, cN))

    # Sanity check against a pure-JAX reference using the raw weights.
    ref_out, (ref_h, ref_c) = _reference_forward(x, (h0, c0), params, NLAYERS)
    assert out.shape == (B, S, H) and hN.shape == (NLAYERS, B, H)
    assert jnp.allclose(out, ref_out, rtol=1e-3, atol=1e-3)
    assert jnp.allclose(hN, ref_h, rtol=1e-3, atol=1e-3)
    assert jnp.allclose(cN, ref_c, rtol=1e-3, atol=1e-3)

    print("KERNEL_OK")
</pallas_src>

<mosaic_0001>
module attributes {stable_mosaic.version = 11 : i64} {
  func.func @kernel(%arg0: memref<16x32xf32, #tpu.memory_space<vmem>>, %arg1: memref<32x256xf32, #tpu.memory_space<vmem>>, %arg2: memref<64x256xf32, #tpu.memory_space<vmem>>, %arg3: memref<1x256xf32, #tpu.memory_space<vmem>>, %arg4: memref<2x64xf32, #tpu.memory_space<vmem>>, %arg5: memref<2x64xf32, #tpu.memory_space<vmem>>, %arg6: memref<16x32xf32, #tpu.memory_space<vmem>>, %arg7: memref<2x64xf32, #tpu.memory_space<vmem>>, %arg8: memref<2x64xf32, #tpu.memory_space<vmem>>, %arg9: memref<16x256xf32, #tpu.memory_space<vmem>>, %arg10: memref<16x32xf32, #tpu.memory_space<vmem>>) attributes {dimension_semantics = [], scalar_prefetch = 0 : i64, scratch_operands = 2 : i64, tpu.core_type = #tpu.core_type<tc>} {
    %c0 = arith.constant 0 : index
    %c0_0 = arith.constant 0 : index
    %0 = vector.load %arg2[%c0, %c0_0] : memref<64x256xf32, #tpu.memory_space<vmem>>, vector<64x256xf32>
    %c0_1 = arith.constant 0 : index
    %c0_2 = arith.constant 0 : index
    %1 = vector.load %arg3[%c0_1, %c0_2] : memref<1x256xf32, #tpu.memory_space<vmem>>, vector<1x256xf32>
    %c0_3 = arith.constant 0 : index
    %c0_4 = arith.constant 0 : index
    %2 = vector.load %arg1[%c0_3, %c0_4] : memref<32x256xf32, #tpu.memory_space<vmem>>, vector<32x256xf32>
    %c0_5 = arith.constant 0 : index
    %c0_6 = arith.constant 0 : index
    %3 = vector.load %arg4[%c0_5, %c0_6] : memref<2x64xf32, #tpu.memory_space<vmem>>, vector<2x64xf32>
    %c0_7 = arith.constant 0 : index
    %c0_8 = arith.constant 0 : index
    %4 = vector.load %arg5[%c0_7, %c0_8] : memref<2x64xf32, #tpu.memory_space<vmem>>, vector<2x64xf32>
    %5 = tpu.iota {dimensions = array<i32: 1>} : vector<2x64xi32>
    %c0_9 = arith.constant 0 : index
    %c0_10 = arith.constant 0 : index
    %6 = vector.load %arg0[%c0_9, %c0_10] : memref<16x32xf32, #tpu.memory_space<vmem>>, vector<16x32xf32>
    %cst = arith.constant dense<0.000000e+00> : vector<16x256xf32>
    %7 = tpu.matmul %6, %2, %cst {dimension_numbers = #tpu.dot_dimension_numbers<[1], [0], [0], [1], [0, 0, 1, 1], [], []>} : vector<16x32xf32>, vector<32x256xf32>, vector<16x256xf32> -> vector<16x256xf32>
    %8 = vector.broadcast %1 : vector<1x256xf32> to vector<16x256xf32>
    %9 = arith.addf %7, %8 : vector<16x256xf32>
    %c0_11 = arith.constant 0 : index
    %c0_12 = arith.constant 0 : index
    %10 = vector.load %arg9[%c0_11, %c0_12] : memref<16x256xf32, #tpu.memory_space<vmem>>, vector<16x256xf32>
    tpu.vector_store %arg9[%c0_11, %c0_12], %9 {strides = array<i32>} : memref<16x256xf32, #tpu.memory_space<vmem>>, vector<16x256xf32>,
    %c0_13 = arith.constant 0 : index
    %c0_14 = arith.constant 0 : index
    %11 = vector.load %arg9[%c0_13, %c0_14] : memref<16x256xf32, #tpu.memory_space<vmem>>, vector<2x256xf32>
    %cst_15 = arith.constant dense<0.000000e+00> : vector<2x256xf32>
    %12 = tpu.matmul %3, %0, %cst_15 {dimension_numbers = #tpu.dot_dimension_numbers<[1], [0], [0], [1], [0, 0, 1, 1], [], []>} : vector<2x64xf32>, vector<64x256xf32>, vector<2x256xf32> -> vector<2x256xf32>
    %13 = arith.addf %11, %12 : vector<2x256xf32>
    %14 = math.tanh %13 : vector<2x256xf32>
    %15 = vector.extract_strided_slice %14 {offsets = [0, 0], sizes = [2, 192], strides = [1, 1]} : vector<2x256xf32> to vector<2x192xf32>
    %cst_16 = arith.constant 5.000000e-01 : f32
    %16 = vector.broadcast %cst_16 : f32 to vector<2x192xf32>
    %17 = arith.mulf %16, %15 : vector<2x192xf32>
    %cst_17 = arith.constant 5.000000e-01 : f32
    %18 = vector.broadcast %cst_17 : f32 to vector<2x192xf32>
    %19 = arith.addf %17, %18 : vector<2x192xf32>
    %20 = vector.extract_strided_slice %19 {offsets = [0, 0], sizes = [2, 64], strides = [1, 1]} : vector<2x192xf32> to vector<2x64xf32>
    %21 = vector.extract_strided_slice %19 {offsets = [0, 64], sizes = [2, 64], strides = [1, 1]} : vector<2x192xf32> to vector<2x64xf32>
    %22 = vector.extract_strided_slice %19 {offsets = [0, 128], sizes = [2, 64], strides = [1, 1]} : vector<2x192xf32> to vector<2x64xf32>
    %23 = vector.extract_strided_slice %14 {offsets = [0, 192], sizes = [2, 64], strides = [1, 1]} : vector<2x256xf32> to vector<2x64xf32>
    %24 = arith.mulf %21, %4 : vector<2x64xf32>
    %25 = arith.mulf %20, %23 : vector<2x64xf32>
    %26 = arith.addf %24, %25 : vector<2x64xf32>
    %27 = math.tanh %26 : vector<2x64xf32>
    %28 = arith.mulf %22, %27 : vector<2x64xf32>
    %c0_i32 = arith.constant 0 : i32
    %29 = vector.broadcast %c0_i32 : i32 to vector<2x64xi32>
    %30 = arith.cmpi sge, %5, %29 : vector<2x64xi32>
    %c32_i32 = arith.constant 32 : i32
    %31 = vector.broadcast %c32_i32 : i32 to vector<2x64xi32>
    %32 = arith.cmpi slt, %5, %31 : vector<2x64xi32>
    %33 = arith.andi %30, %32 : vector<2x64xi1>
    %34 = arith.select %33, %28, %3 : vector<2x64xi1>, vector<2x64xf32>
    %35 = arith.select %33, %26, %4 : vector<2x64xi1>, vector<2x64xf32>
    %c2 = arith.constant 2 : index
    %c0_18 = arith.constant 0 : index
    %36 = vector.load %arg9[%c2, %c0_18] : memref<16x256xf32, #tpu.memory_space<vmem>>, vector<2x256xf32>
    %cst_19 = arith.constant dense<0.000000e+00> : vector<2x256xf32>
    %37 = tpu.matmul %34, %0, %cst_19 {dimension_numbers = #tpu.dot_dimension_numbers<[1], [0], [0], [1], [0, 0, 1, 1], [], []>} : vector<2x64xf32>, vector<64x256xf32>, vector<2x256xf32> -> vector<2x256xf32>
    %38 = arith.addf %36, %37 : vector<2x256xf32>
    %39 = math.tanh %38 : vector<2x256xf32>
    %40 = vector.extract_strided_slice %39 {offsets = [0, 0], sizes = [2, 192], strides = [1, 1]} : vector<2x256xf32> to vector<2x192xf32>
    %cst_20 = arith.constant 5.000000e-01 : f32
    %41 = vector.broadcast %cst_20 : f32 to vector<2x192xf32>
    %42 = arith.mulf %41, %40 : vector<2x192xf32>
    %cst_21 = arith.constant 5.000000e-01 : f32
    %43 = vector.broadcast %cst_21 : f32 to vector<2x192xf32>
    %44 = arith.addf %42, %43 : vector<2x192xf32>
    %45 = vector.extract_strided_slice %44 {offsets = [0, 0], sizes = [2, 64], strides = [1, 1]} : vector<2x192xf32> to vector<2x64xf32>
    %46 = vector.extract_strided_slice %44 {offsets = [0, 64], sizes = [2, 64], strides = [1, 1]} : vector<2x192xf32> to vector<2x64xf32>
    %47 = vector.extract_strided_slice %44 {offsets = [0, 128], sizes = [2, 64], strides = [1, 1]} : vector<2x192xf32> to vector<2x64xf32>
    %48 = vector.extract_strided_slice %39 {offsets = [0, 192], sizes = [2, 64], strides = [1, 1]} : vector<2x256xf32> to vector<2x64xf32>
    %49 = arith.mulf %46, %35 : vector<2x64xf32>
    %50 = arith.mulf %45, %48 : vector<2x64xf32>
    %51 = arith.addf %49, %50 : vector<2x64xf32>
    %52 = math.tanh %51 : vector<2x64xf32>
    %53 = arith.mulf %47, %52 : vector<2x64xf32>
    %54 = vector.extract_strided_slice %53 {offsets = [0, 32], sizes = [2, 32], strides = [1, 1]} : vector<2x64xf32> to vector<2x32xf32>
    %c0_22 = arith.constant 0 : index
    %c0_23 = arith.constant 0 : index
    %55 = vector.load %arg10[%c0_22, %c0_23] : memref<16x32xf32, #tpu.memory_space<vmem>>, vector<2x32xf32>
    tpu.vector_store %arg10[%c0_22, %c0_23], %54 {strides = array<i32>} : memref<16x32xf32, #tpu.memory_space<vmem>>, vector<2x32xf32>,
    %c4 = arith.constant 4 : index
    %c0_24 = arith.constant 0 : index
    %56 = vector.load %arg9[%c4, %c0_24] : memref<16x256xf32, #tpu.memory_space<vmem>>, vector<2x256xf32>
    %cst_25 = arith.constant dense<0.000000e+00> : vector<2x256xf32>
    %57 = tpu.matmul %53, %0, %cst_25 {dimension_numbers = #tpu.dot_dimension_numbers<[1], [0], [0], [1], [0, 0, 1, 1], [], []>} : vector<2x64xf32>, vector<64x256xf32>, vector<2x256xf32> -> vector<2x256xf32>
    %58 = arith.addf %56, %57 : vector<2x256xf32>
    %59 = math.tanh %58 : vector<2x256xf32>
    %60 = vector.extract_strided_slice %59 {offsets = [0, 0], sizes = [2, 192], strides = [1, 1]} : vector<2x256xf32> to vector<2x192xf32>
    %cst_26 = arith.constant 5.000000e-01 : f32
    %61 = vector.broadcast %cst_26 : f32 to vector<2x192xf32>
    %62 = arith.mulf %61, %60 : vector<2x192xf32>
    %cst_27 = arith.constant 5.000000e-01 : f32
    %63 = vector.broadcast %cst_27 : f32 to vector<2x192xf32>
    %64 = arith.addf %62, %63 : vector<2x192xf32>
    %65 = vector.extract_strided_slice %64 {offsets = [0, 0], sizes = [2, 64], strides = [1, 1]} : vector<2x192xf32> to vector<2x64xf32>
    %66 = vector.extract_strided_slice %64 {offsets = [0, 64], sizes = [2, 64], strides = [1, 1]} : vector<2x192xf32> to vector<2x64xf32>
    %67 = vector.extract_strided_slice %64 {offsets = [0, 128], sizes = [2, 64], strides = [1, 1]} : vector<2x192xf32> to vector<2x64xf32>
    %68 = vector.extract_strided_slice %59 {offsets = [0, 192], sizes = [2, 64], strides = [1, 1]} : vector<2x256xf32> to vector<2x64xf32>
    %69 = arith.mulf %66, %51 : vector<2x64xf32>
    %70 = arith.mulf %65, %68 : vector<2x64xf32>
    %71 = arith.addf %69, %70 : vector<2x64xf32>
    %72 = math.tanh %71 : vector<2x64xf32>
    %73 = arith.mulf %67, %72 : vector<2x64xf32>
    %74 = vector.extract_strided_slice %73 {offsets = [0, 32], sizes = [2, 32], strides = [1, 1]} : vector<2x64xf32> to vector<2x32xf32>
    %c2_28 = arith.constant 2 : index
    %c0_29 = arith.constant 0 : index
    %75 = vector.load %arg10[%c2_28, %c0_29] : memref<16x32xf32, #tpu.memory_space<vmem>>, vector<2x32xf32>
    tpu.vector_store %arg10[%c2_28, %c0_29], %74 {strides = array<i32>} : memref<16x32xf32, #tpu.memory_space<vmem>>, vector<2x32xf32>,
    %c6 = arith.constant 6 : index
    %c0_30 = arith.constant 0 : index
    %76 = vector.load %arg9[%c6, %c0_30] : memref<16x256xf32, #tpu.memory_space<vmem>>, vector<2x256xf32>
    %cst_31 = arith.constant dense<0.000000e+00> : vector<2x256xf32>
    %77 = tpu.matmul %73, %0, %cst_31 {dimension_numbers = #tpu.dot_dimension_numbers<[1], [0], [0], [1], [0, 0, 1, 1], [], []>} : vector<2x64xf32>, vector<64x256xf32>, vector<2x256xf32> -> vector<2x256xf32>
    %78 = arith.addf %76, %77 : vector<2x256xf32>
    %79 = math.tanh %78 : vector<2x256xf32>
    %80 = vector.extract_strided_slice %79 {offsets = [0, 0], sizes = [2, 192], strides = [1, 1]} : vector<2x256xf32> to vector<2x192xf32>
    %cst_32 = arith.constant 5.000000e-01 : f32
    %81 = vector.broadcast %cst_32 : f32 to vector<2x192xf32>
    %82 = arith.mulf %81, %80 : vector<2x192xf32>
    %cst_33 = arith.constant 5.000000e-01 : f32
    %83 = vector.broadcast %cst_33 : f32 to vector<2x192xf32>
    %84 = arith.addf %82, %83 : vector<2x192xf32>
    %85 = vector.extract_strided_slice %84 {offsets = [0, 0], sizes = [2, 64], strides = [1, 1]} : vector<2x192xf32> to vector<2x64xf32>
    %86 = vector.extract_strided_slice %84 {offsets = [0, 64], sizes = [2, 64], strides = [1, 1]} : vector<2x192xf32> to vector<2x64xf32>
    %87 = vector.extract_strided_slice %84 {offsets = [0, 128], sizes = [2, 64], strides = [1, 1]} : vector<2x192xf32> to vector<2x64xf32>
    %88 = vector.extract_strided_slice %79 {offsets = [0, 192], sizes = [2, 64], strides = [1, 1]} : vector<2x256xf32> to vector<2x64xf32>
    %89 = arith.mulf %86, %71 : vector<2x64xf32>
    %90 = arith.mulf %85, %88 : vector<2x64xf32>
    %91 = arith.addf %89, %90 : vector<2x64xf32>
    %92 = math.tanh %91 : vector<2x64xf32>
    %93 = arith.mulf %87, %92 : vector<2x64xf32>
    %94 = vector.extract_strided_slice %93 {offsets = [0, 32], sizes = [2, 32], strides = [1, 1]} : vector<2x64xf32> to vector<2x32xf32>
    %c4_34 = arith.constant 4 : index
    %c0_35 = arith.constant 0 : index
    %95 = vector.load %arg10[%c4_34, %c0_35] : memref<16x32xf32, #tpu.memory_space<vmem>>, vector<2x32xf32>
    tpu.vector_store %arg10[%c4_34, %c0_35], %94 {strides = array<i32>} : memref<16x32xf32, #tpu.memory_space<vmem>>, vector<2x32xf32>,
    %c8 = arith.constant 8 : index
    %c0_36 = arith.constant 0 : index
    %96 = vector.load %arg9[%c8, %c0_36] : memref<16x256xf32, #tpu.memory_space<vmem>>, vector<2x256xf32>
    %cst_37 = arith.constant dense<0.000000e+00> : vector<2x256xf32>
    %97 = tpu.matmul %93, %0, %cst_37 {dimension_numbers = #tpu.dot_dimension_numbers<[1], [0], [0], [1], [0, 0, 1, 1], [], []>} : vector<2x64xf32>, vector<64x256xf32>, vector<2x256xf32> -> vector<2x256xf32>
    %98 = arith.addf %96, %97 : vector<2x256xf32>
    %99 = math.tanh %98 : vector<2x256xf32>
    %100 = vector.extract_strided_slice %99 {offsets = [0, 0], sizes = [2, 192], strides = [1, 1]} : vector<2x256xf32> to vector<2x192xf32>
    %cst_38 = arith.constant 5.000000e-01 : f32
    %101 = vector.broadcast %cst_38 : f32 to vector<2x192xf32>
    %102 = arith.mulf %101, %100 : vector<2x192xf32>
    %cst_39 = arith.constant 5.000000e-01 : f32
    %103 = vector.broadcast %cst_39 : f32 to vector<2x192xf32>
    %104 = arith.addf %102, %103 : vector<2x192xf32>
    %105 = vector.extract_strided_slice %104 {offsets = [0, 0], sizes = [2, 64], strides = [1, 1]} : vector<2x192xf32> to vector<2x64xf32>
    %106 = vector.extract_strided_slice %104 {offsets = [0, 64], sizes = [2, 64], strides = [1, 1]} : vector<2x192xf32> to vector<2x64xf32>
    %107 = vector.extract_strided_slice %104 {offsets = [0, 128], sizes = [2, 64], strides = [1, 1]} : vector<2x192xf32> to vector<2x64xf32>
    %108 = vector.extract_strided_slice %99 {offsets = [0, 192], sizes = [2, 64], strides = [1, 1]} : vector<2x256xf32> to vector<2x64xf32>
    %109 = arith.mulf %106, %91 : vector<2x64xf32>
    %110 = arith.mulf %105, %108 : vector<2x64xf32>
    %111 = arith.addf %109, %110 : vector<2x64xf32>
    %112 = math.tanh %111 : vector<2x64xf32>
    %113 = arith.mulf %107, %112 : vector<2x64xf32>
    %114 = vector.extract_strided_slice %113 {offsets = [0, 32], sizes = [2, 32], strides = [1, 1]} : vector<2x64xf32> to vector<2x32xf32>
    %c6_40 = arith.constant 6 : index
    %c0_41 = arith.constant 0 : index
    %115 = vector.load %arg10[%c6_40, %c0_41] : memref<16x32xf32, #tpu.memory_space<vmem>>, vector<2x32xf32>
    tpu.vector_store %arg10[%c6_40, %c0_41], %114 {strides = array<i32>} : memref<16x32xf32, #tpu.memory_space<vmem>>, vector<2x32xf32>,
    %c10 = arith.constant 10 : index
    %c0_42 = arith.constant 0 : index
    %116 = vector.load %arg9[%c10, %c0_42] : memref<16x256xf32, #tpu.memory_space<vmem>>, vector<2x256xf32>
    %cst_43 = arith.constant dense<0.000000e+00> : vector<2x256xf32>
    %117 = tpu.matmul %113, %0, %cst_43 {dimension_numbers = #tpu.dot_dimension_numbers<[1], [0], [0], [1], [0, 0, 1, 1], [], []>} : vector<2x64xf32>, vector<64x256xf32>, vector<2x256xf32> -> vector<2x256xf32>
    %118 = arith.addf %116, %117 : vector<2x256xf32>
    %119 = math.tanh %118 : vector<2x256xf32>
    %120 = vector.extract_strided_slice %119 {offsets = [0, 0], sizes = [2, 192], strides = [1, 1]} : vector<2x256xf32> to vector<2x192xf32>
    %cst_44 = arith.constant 5.000000e-01 : f32
    %121 = vector.broadcast %cst_44 : f32 to vector<2x192xf32>
    %122 = arith.mulf %121, %120 : vector<2x192xf32>
    %cst_45 = arith.constant 5.000000e-01 : f32
    %123 = vector.broadcast %cst_45 : f32 to vector<2x192xf32>
    %124 = arith.addf %122, %123 : vector<2x192xf32>
    %125 = vector.extract_strided_slice %124 {offsets = [0, 0], sizes = [2, 64], strides = [1, 1]} : vector<2x192xf32> to vector<2x64xf32>
    %126 = vector.extract_strided_slice %124 {offsets = [0, 64], sizes = [2, 64], strides = [1, 1]} : vector<2x192xf32> to vector<2x64xf32>
    %127 = vector.extract_strided_slice %124 {offsets = [0, 128], sizes = [2, 64], strides = [1, 1]} : vector<2x192xf32> to vector<2x64xf32>
    %128 = vector.extract_strided_slice %119 {offsets = [0, 192], sizes = [2, 64], strides = [1, 1]} : vector<2x256xf32> to vector<2x64xf32>
    %129 = arith.mulf %126, %111 : vector<2x64xf32>
    %130 = arith.mulf %125, %128 : vector<2x64xf32>
    %131 = arith.addf %129, %130 : vector<2x64xf32>
    %132 = math.tanh %131 : vector<2x64xf32>
    %133 = arith.mulf %127, %132 : vector<2x64xf32>
    %134 = vector.extract_strided_slice %133 {offsets = [0, 32], sizes = [2, 32], strides = [1, 1]} : vector<2x64xf32> to vector<2x32xf32>
    %c8_46 = arith.constant 8 : index
    %c0_47 = arith.constant 0 : index
    %135 = vector.load %arg10[%c8_46, %c0_47] : memref<16x32xf32, #tpu.memory_space<vmem>>, vector<2x32xf32>
    tpu.vector_store %arg10[%c8_46, %c0_47], %134 {strides = array<i32>} : memref<16x32xf32, #tpu.memory_space<vmem>>, vector<2x32xf32>,
    %c12 = arith.constant 12 : index
    %c0_48 = arith.constant 0 : index
    %136 = vector.load %arg9[%c12, %c0_48] : memref<16x256xf32, #tpu.memory_space<vmem>>, vector<2x256xf32>
    %cst_49 = arith.constant dense<0.000000e+00> : vector<2x256xf32>
    %137 = tpu.matmul %133, %0, %cst_49 {dimension_numbers = #tpu.dot_dimension_numbers<[1], [0], [0], [1], [0, 0, 1, 1], [], []>} : vector<2x64xf32>, vector<64x256xf32>, vector<2x256xf32> -> vector<2x256xf32>
    %138 = arith.addf %136, %137 : vector<2x256xf32>
    %139 = math.tanh %138 : vector<2x256xf32>
    %140 = vector.extract_strided_slice %139 {offsets = [0, 0], sizes = [2, 192], strides = [1, 1]} : vector<2x256xf32> to vector<2x192xf32>
    %cst_50 = arith.constant 5.000000e-01 : f32
    %141 = vector.broadcast %cst_50 : f32 to vector<2x192xf32>
    %142 = arith.mulf %141, %140 : vector<2x192xf32>
    %cst_51 = arith.constant 5.000000e-01 : f32
    %143 = vector.broadcast %cst_51 : f32 to vector<2x192xf32>
    %144 = arith.addf %142, %143 : vector<2x192xf32>
    %145 = vector.extract_strided_slice %144 {offsets = [0, 0], sizes = [2, 64], strides = [1, 1]} : vector<2x192xf32> to vector<2x64xf32>
    %146 = vector.extract_strided_slice %144 {offsets = [0, 64], sizes = [2, 64], strides = [1, 1]} : vector<2x192xf32> to vector<2x64xf32>
    %147 = vector.extract_strided_slice %144 {offsets = [0, 128], sizes = [2, 64], strides = [1, 1]} : vector<2x192xf32> to vector<2x64xf32>
    %148 = vector.extract_strided_slice %139 {offsets = [0, 192], sizes = [2, 64], strides = [1, 1]} : vector<2x256xf32> to vector<2x64xf32>
    %149 = arith.mulf %146, %131 : vector<2x64xf32>
    %150 = arith.mulf %145, %148 : vector<2x64xf32>
    %151 = arith.addf %149, %150 : vector<2x64xf32>
    %152 = math.tanh %151 : vector<2x64xf32>
    %153 = arith.mulf %147, %152 : vector<2x64xf32>
    %154 = vector.extract_strided_slice %153 {offsets = [0, 32], sizes = [2, 32], strides = [1, 1]} : vector<2x64xf32> to vector<2x32xf32>
    %c10_52 = arith.constant 10 : index
    %c0_53 = arith.constant 0 : index
    %155 = vector.load %arg10[%c10_52, %c0_53] : memref<16x32xf32, #tpu.memory_space<vmem>>, vector<2x32xf32>
    tpu.vector_store %arg10[%c10_52, %c0_53], %154 {strides = array<i32>} : memref<16x32xf32, #tpu.memory_space<vmem>>, vector<2x32xf32>,
    %c14 = arith.constant 14 : index
    %c0_54 = arith.constant 0 : index
    %156 = vector.load %arg9[%c14, %c0_54] : memref<16x256xf32, #tpu.memory_space<vmem>>, vector<2x256xf32>
    %cst_55 = arith.constant dense<0.000000e+00> : vector<2x256xf32>
    %157 = tpu.matmul %153, %0, %cst_55 {dimension_numbers = #tpu.dot_dimension_numbers<[1], [0], [0], [1], [0, 0, 1, 1], [], []>} : vector<2x64xf32>, vector<64x256xf32>, vector<2x256xf32> -> vector<2x256xf32>
    %158 = arith.addf %156, %157 : vector<2x256xf32>
    %159 = math.tanh %158 : vector<2x256xf32>
    %160 = vector.extract_strided_slice %159 {offsets = [0, 0], sizes = [2, 192], strides = [1, 1]} : vector<2x256xf32> to vector<2x192xf32>
    %cst_56 = arith.constant 5.000000e-01 : f32
    %161 = vector.broadcast %cst_56 : f32 to vector<2x192xf32>
    %162 = arith.mulf %161, %160 : vector<2x192xf32>
    %cst_57 = arith.constant 5.000000e-01 : f32
    %163 = vector.broadcast %cst_57 : f32 to vector<2x192xf32>
    %164 = arith.addf %162, %163 : vector<2x192xf32>
    %165 = vector.extract_strided_slice %164 {offsets = [0, 0], sizes = [2, 64], strides = [1, 1]} : vector<2x192xf32> to vector<2x64xf32>
    %166 = vector.extract_strided_slice %164 {offsets = [0, 64], sizes = [2, 64], strides = [1, 1]} : vector<2x192xf32> to vector<2x64xf32>
    %167 = vector.extract_strided_slice %164 {offsets = [0, 128], sizes = [2, 64], strides = [1, 1]} : vector<2x192xf32> to vector<2x64xf32>
    %168 = vector.extract_strided_slice %159 {offsets = [0, 192], sizes = [2, 64], strides = [1, 1]} : vector<2x256xf32> to vector<2x64xf32>
    %169 = arith.mulf %166, %151 : vector<2x64xf32>
    %170 = arith.mulf %165, %168 : vector<2x64xf32>
    %171 = arith.addf %169, %170 : vector<2x64xf32>
    %172 = math.tanh %171 : vector<2x64xf32>
    %173 = arith.mulf %167, %172 : vector<2x64xf32>
    %174 = vector.extract_strided_slice %173 {offsets = [0, 32], sizes = [2, 32], strides = [1, 1]} : vector<2x64xf32> to vector<2x32xf32>
    %c12_58 = arith.constant 12 : index
    %c0_59 = arith.constant 0 : index
    %175 = vector.load %arg10[%c12_58, %c0_59] : memref<16x32xf32, #tpu.memory_space<vmem>>, vector<2x32xf32>
    tpu.vector_store %arg10[%c12_58, %c0_59], %174 {strides = array<i32>} : memref<16x32xf32, #tpu.memory_space<vmem>>, vector<2x32xf32>,
    %cst_60 = arith.constant dense<0.000000e+00> : vector<2x256xf32>
    %176 = tpu.matmul %173, %0, %cst_60 {dimension_numbers = #tpu.dot_dimension_numbers<[1], [0], [0], [1], [0, 0, 1, 1], [], []>} : vector<2x64xf32>, vector<64x256xf32>, vector<2x256xf32> -> vector<2x256xf32>
    %177 = vector.broadcast %1 : vector<1x256xf32> to vector<2x256xf32>
    %178 = arith.addf %177, %176 : vector<2x256xf32>
    %179 = math.tanh %178 : vector<2x256xf32>
    %180 = vector.extract_strided_slice %179 {offsets = [0, 0], sizes = [2, 192], strides = [1, 1]} : vector<2x256xf32> to vector<2x192xf32>
    %cst_61 = arith.constant 5.000000e-01 : f32
    %181 = vector.broadcast %cst_61 : f32 to vector<2x192xf32>
    %182 = arith.mulf %181, %180 : vector<2x192xf32>
    %cst_62 = arith.constant 5.000000e-01 : f32
    %183 = vector.broadcast %cst_62 : f32 to vector<2x192xf32>
    %184 = arith.addf %182, %183 : vector<2x192xf32>
    %185 = vector.extract_strided_slice %184 {offsets = [0, 0], sizes = [2, 64], strides = [1, 1]} : vector<2x192xf32> to vector<2x64xf32>
    %186 = vector.extract_strided_slice %184 {offsets = [0, 64], sizes = [2, 64], strides = [1, 1]} : vector<2x192xf32> to vector<2x64xf32>
    %187 = vector.extract_strided_slice %184 {offsets = [0, 128], sizes = [2, 64], strides = [1, 1]} : vector<2x192xf32> to vector<2x64xf32>
    %188 = vector.extract_strided_slice %179 {offsets = [0, 192], sizes = [2, 64], strides = [1, 1]} : vector<2x256xf32> to vector<2x64xf32>
    %189 = arith.mulf %186, %171 : vector<2x64xf32>
    %190 = arith.mulf %185, %188 : vector<2x64xf32>
    %191 = arith.addf %189, %190 : vector<2x64xf32>
    %192 = math.tanh %191 : vector<2x64xf32>
    %193 = arith.mulf %187, %192 : vector<2x64xf32>
    %c32_i32_63 = arith.constant 32 : i32
    %194 = vector.broadcast %c32_i32_63 : i32 to vector<2x64xi32>
    %195 = arith.cmpi sge, %5, %194 : vector<2x64xi32>
    %c64_i32 = arith.constant 64 : i32
    %196 = vector.broadcast %c64_i32 : i32 to vector<2x64xi32>
    %197 = arith.cmpi slt, %5, %196 : vector<2x64xi32>
    %198 = arith.andi %195, %197 : vector<2x64xi1>
    %199 = arith.select %198, %193, %173 : vector<2x64xi1>, vector<2x64xf32>
    %200 = arith.select %198, %191, %171 : vector<2x64xi1>, vector<2x64xf32>
    %201 = vector.extract_strided_slice %199 {offsets = [0, 32], sizes = [2, 32], strides = [1, 1]} : vector<2x64xf32> to vector<2x32xf32>
    %c14_64 = arith.constant 14 : index
    %c0_65 = arith.constant 0 : index
    %202 = vector.load %arg10[%c14_64, %c0_65] : memref<16x32xf32, #tpu.memory_space<vmem>>, vector<2x32xf32>
    tpu.vector_store %arg10[%c14_64, %c0_65], %201 {strides = array<i32>} : memref<16x32xf32, #tpu.memory_space<vmem>>, vector<2x32xf32>,
    %c0_66 = arith.constant 0 : index
    %c0_67 = arith.constant 0 : index
    %203 = vector.load %arg10[%c0_66, %c0_67] : memref<16x32xf32, #tpu.memory_space<vmem>>, vector<16x32xf32>
    %cst_68 = arith.constant dense<0.000000e+00> : vector<16x256xf32>
    %204 = tpu.matmul %203, %2, %cst_68 {dimension_numbers = #tpu.dot_dimension_numbers<[1], [0], [0], [1], [0, 0, 1, 1], [], []>} : vector<16x32xf32>, vector<32x256xf32>, vector<16x256xf32> -> vector<16x256xf32>
    %205 = vector.broadcast %1 : vector<1x256xf32> to vector<16x256xf32>
    %206 = arith.addf %204, %205 : vector<16x256xf32>
    %c0_69 = arith.constant 0 : index
    %c0_70 = arith.constant 0 : index
    %207 = vector.load %arg9[%c0_69, %c0_70] : memref<16x256xf32, #tpu.memory_space<vmem>>, vector<16x256xf32>
    tpu.vector_store %arg9[%c0_69, %c0_70], %206 {strides = array<i32>} : memref<16x256xf32, #tpu.memory_space<vmem>>, vector<16x256xf32>,
    %c0_71 = arith.constant 0 : index
    %c0_72 = arith.constant 0 : index
    %208 = vector.load %arg9[%c0_71, %c0_72] : memref<16x256xf32, #tpu.memory_space<vmem>>, vector<2x256xf32>
    %cst_73 = arith.constant dense<0.000000e+00> : vector<2x256xf32>
    %209 = tpu.matmul %199, %0, %cst_73 {dimension_numbers = #tpu.dot_dimension_numbers<[1], [0], [0], [1], [0, 0, 1, 1], [], []>} : vector<2x64xf32>, vector<64x256xf32>, vector<2x256xf32> -> vector<2x256xf32>
    %210 = arith.addf %208, %209 : vector<2x256xf32>
    %211 = math.tanh %210 : vector<2x256xf32>
    %212 = vector.extract_strided_slice %211 {offsets = [0, 0], sizes = [2, 192], strides = [1, 1]} : vector<2x256xf32> to vector<2x192xf32>
    %cst_74 = arith.constant 5.000000e-01 : f32
    %213 = vector.broadcast %cst_74 : f32 to vector<2x192xf32>
    %214 = arith.mulf %213, %212 : vector<2x192xf32>
    %cst_75 = arith.constant 5.000000e-01 : f32
    %215 = vector.broadcast %cst_75 : f32 to vector<2x192xf32>
    %216 = arith.addf %214, %215 : vector<2x192xf32>
    %217 = vector.extract_strided_slice %216 {offsets = [0, 0], sizes = [2, 64], strides = [1, 1]} : vector<2x192xf32> to vector<2x64xf32>
    %218 = vector.extract_strided_slice %216 {offsets = [0, 64], sizes = [2, 64], strides = [1, 1]} : vector<2x192xf32> to vector<2x64xf32>
    %219 = vector.extract_strided_slice %216 {offsets = [0, 128], sizes = [2, 64], strides = [1, 1]} : vector<2x192xf32> to vector<2x64xf32>
    %220 = vector.extract_strided_slice %211 {offsets = [0, 192], sizes = [2, 64], strides = [1, 1]} : vector<2x256xf32> to vector<2x64xf32>
    %221 = arith.mulf %218, %200 : vector<2x64xf32>
    %222 = arith.mulf %217, %220 : vector<2x64xf32>
    %223 = arith.addf %221, %222 : vector<2x64xf32>
    %224 = math.tanh %223 : vector<2x64xf32>
    %225 = arith.mulf %219, %224 : vector<2x64xf32>
    %c0_i32_76 = arith.constant 0 : i32
    %226 = vector.broadcast %c0_i32_76 : i32 to vector<2x64xi32>
    %227 = arith.cmpi sge, %5, %226 : vector<2x64xi32>
    %c32_i32_77 = arith.constant 32 : i32
    %228 = vector.broadcast %c32_i32_77 : i32 to vector<2x64xi32>
    %229 = arith.cmpi slt, %5, %228 : vector<2x64xi32>
    %230 = arith.andi %227, %229 : vector<2x64xi1>
    %231 = arith.select %230, %225, %199 : vector<2x64xi1>, vector<2x64xf32>
    %232 = arith.select %230, %223, %200 : vector<2x64xi1>, vector<2x64xf32>
    %c2_78 = arith.constant 2 : index
    %c0_79 = arith.constant 0 : index
    %233 = vector.load %arg9[%c2_78, %c0_79] : memref<16x256xf32, #tpu.memory_space<vmem>>, vector<2x256xf32>
    %cst_80 = arith.constant dense<0.000000e+00> : vector<2x256xf32>
    %234 = tpu.matmul %231, %0, %cst_80 {dimension_numbers = #tpu.dot_dimension_numbers<[1], [0], [0], [1], [0, 0, 1, 1], [], []>} : vector<2x64xf32>, vector<64x256xf32>, vector<2x256xf32> -> vector<2x256xf32>
    %235 = arith.addf %233, %234 : vector<2x256xf32>
    %236 = math.tanh %235 : vector<2x256xf32>
    %237 = vector.extract_strided_slice %236 {offsets = [0, 0], sizes = [2, 192], strides = [1, 1]} : vector<2x256xf32> to vector<2x192xf32>
    %cst_81 = arith.constant 5.000000e-01 : f32
    %238 = vector.broadcast %cst_81 : f32 to vector<2x192xf32>
    %239 = arith.mulf %238, %237 : vector<2x192xf32>
    %cst_82 = arith.constant 5.000000e-01 : f32
    %240 = vector.broadcast %cst_82 : f32 to vector<2x192xf32>
    %241 = arith.addf %239, %240 : vector<2x192xf32>
    %242 = vector.extract_strided_slice %241 {offsets = [0, 0], sizes = [2, 64], strides = [1, 1]} : vector<2x192xf32> to vector<2x64xf32>
    %243 = vector.extract_strided_slice %241 {offsets = [0, 64], sizes = [2, 64], strides = [1, 1]} : vector<2x192xf32> to vector<2x64xf32>
    %244 = vector.extract_strided_slice %241 {offsets = [0, 128], sizes = [2, 64], strides = [1, 1]} : vector<2x192xf32> to vector<2x64xf32>
    %245 = vector.extract_strided_slice %236 {offsets = [0, 192], sizes = [2, 64], strides = [1, 1]} : vector<2x256xf32> to vector<2x64xf32>
    %246 = arith.mulf %243, %232 : vector<2x64xf32>
    %247 = arith.mulf %242, %245 : vector<2x64xf32>
    %248 = arith.addf %246, %247 : vector<2x64xf32>
    %249 = math.tanh %248 : vector<2x64xf32>
    %250 = arith.mulf %244, %249 : vector<2x64xf32>
    %251 = vector.extract_strided_slice %250 {offsets = [0, 32], sizes = [2, 32], strides = [1, 1]} : vector<2x64xf32> to vector<2x32xf32>
    %c0_83 = arith.constant 0 : index
    %c0_84 = arith.constant 0 : index
    %252 = vector.load %arg6[%c0_83, %c0_84] : memref<16x32xf32, #tpu.memory_space<vmem>>, vector<2x32xf32>
    tpu.vector_store %arg6[%c0_83, %c0_84], %251 {strides = array<i32>} : memref<16x32xf32, #tpu.memory_space<vmem>>, vector<2x32xf32>,
    %c4_85 = arith.constant 4 : index
    %c0_86 = arith.constant 0 : index
    %253 = vector.load %arg9[%c4_85, %c0_86] : memref<16x256xf32, #tpu.memory_space<vmem>>, vector<2x256xf32>
    %cst_87 = arith.constant dense<0.000000e+00> : vector<2x256xf32>
    %254 = tpu.matmul %250, %0, %cst_87 {dimension_numbers = #tpu.dot_dimension_numbers<[1], [0], [0], [1], [0, 0, 1, 1], [], []>} : vector<2x64xf32>, vector<64x256xf32>, vector<2x256xf32> -> vector<2x256xf32>
    %255 = arith.addf %253, %254 : vector<2x256xf32>
    %256 = math.tanh %255 : vector<2x256xf32>
    %257 = vector.extract_strided_slice %256 {offsets = [0, 0], sizes = [2, 192], strides = [1, 1]} : vector<2x256xf32> to vector<2x192xf32>
    %cst_88 = arith.constant 5.000000e-01 : f32
    %258 = vector.broadcast %cst_88 : f32 to vector<2x192xf32>
    %259 = arith.mulf %258, %257 : vector<2x192xf32>
    %cst_89 = arith.constant 5.000000e-01 : f32
    %260 = vector.broadcast %cst_89 : f32 to vector<2x192xf32>
    %261 = arith.addf %259, %260 : vector<2x192xf32>
    %262 = vector.extract_strided_slice %261 {offsets = [0, 0], sizes = [2, 64], strides = [1, 1]} : vector<2x192xf32> to vector<2x64xf32>
    %263 = vector.extract_strided_slice %261 {offsets = [0, 64], sizes = [2, 64], strides = [1, 1]} : vector<2x192xf32> to vector<2x64xf32>
    %264 = vector.extract_strided_slice %261 {offsets = [0, 128], sizes = [2, 64], strides = [1, 1]} : vector<2x192xf32> to vector<2x64xf32>
    %265 = vector.extract_strided_slice %256 {offsets = [0, 192], sizes = [2, 64], strides = [1, 1]} : vector<2x256xf32> to vector<2x64xf32>
    %266 = arith.mulf %263, %248 : vector<2x64xf32>
    %267 = arith.mulf %262, %265 : vector<2x64xf32>
    %268 = arith.addf %266, %267 : vector<2x64xf32>
    %269 = math.tanh %268 : vector<2x64xf32>
    %270 = arith.mulf %264, %269 : vector<2x64xf32>
    %271 = vector.extract_strided_slice %270 {offsets = [0, 32], sizes = [2, 32], strides = [1, 1]} : vector<2x64xf32> to vector<2x32xf32>
    %c2_90 = arith.constant 2 : index
    %c0_91 = arith.constant 0 : index
    %272 = vector.load %arg6[%c2_90, %c0_91] : memref<16x32xf32, #tpu.memory_space<vmem>>, vector<2x32xf32>
    tpu.vector_store %arg6[%c2_90, %c0_91], %271 {strides = array<i32>} : memref<16x32xf32, #tpu.memory_space<vmem>>, vector<2x32xf32>,
    %c6_92 = arith.constant 6 : index
    %c0_93 = arith.constant 0 : index
    %273 = vector.load %arg9[%c6_92, %c0_93] : memref<16x256xf32, #tpu.memory_space<vmem>>, vector<2x256xf32>
    %cst_94 = arith.constant dense<0.000000e+00> : vector<2x256xf32>
    %274 = tpu.matmul %270, %0, %cst_94 {dimension_numbers = #tpu.dot_dimension_numbers<[1], [0], [0], [1], [0, 0, 1, 1], [], []>} : vector<2x64xf32>, vector<64x256xf32>, vector<2x256xf32> -> vector<2x256xf32>
    %275 = arith.addf %273, %274 : vector<2x256xf32>
    %276 = math.tanh %275 : vector<2x256xf32>
    %277 = vector.extract_strided_slice %276 {offsets = [0, 0], sizes = [2, 192], strides = [1, 1]} : vector<2x256xf32> to vector<2x192xf32>
    %cst_95 = arith.constant 5.000000e-01 : f32
    %278 = vector.broadcast %cst_95 : f32 to vector<2x192xf32>
    %279 = arith.mulf %278, %277 : vector<2x192xf32>
    %cst_96 = arith.constant 5.000000e-01 : f32
    %280 = vector.broadcast %cst_96 : f32 to vector<2x192xf32>
    %281 = arith.addf %279, %280 : vector<2x192xf32>
    %282 = vector.extract_strided_slice %281 {offsets = [0, 0], sizes = [2, 64], strides = [1, 1]} : vector<2x192xf32> to vector<2x64xf32>
    %283 = vector.extract_strided_slice %281 {offsets = [0, 64], sizes = [2, 64], strides = [1, 1]} : vector<2x192xf32> to vector<2x64xf32>
    %284 = vector.extract_strided_slice %281 {offsets = [0, 128], sizes = [2, 64], strides = [1, 1]} : vector<2x192xf32> to vector<2x64xf32>
    %285 = vector.extract_strided_slice %276 {offsets = [0, 192], sizes = [2, 64], strides = [1, 1]} : vector<2x256xf32> to vector<2x64xf32>
    %286 = arith.mulf %283, %268 : vector<2x64xf32>
    %287 = arith.mulf %282, %285 : vector<2x64xf32>
    %288 = arith.addf %286, %287 : vector<2x64xf32>
    %289 = math.tanh %288 : vector<2x64xf32>
    %290 = arith.mulf %284, %289 : vector<2x64xf32>
    %291 = vector.extract_strided_slice %290 {offsets = [0, 32], sizes = [2, 32], strides = [1, 1]} : vector<2x64xf32> to vector<2x32xf32>
    %c4_97 = arith.constant 4 : index
    %c0_98 = arith.constant 0 : index
    %292 = vector.load %arg6[%c4_97, %c0_98] : memref<16x32xf32, #tpu.memory_space<vmem>>, vector<2x32xf32>
    tpu.vector_store %arg6[%c4_97, %c0_98], %291 {strides = array<i32>} : memref<16x32xf32, #tpu.memory_space<vmem>>, vector<2x32xf32>,
    %c8_99 = arith.constant 8 : index
    %c0_100 = arith.constant 0 : index
    %293 = vector.load %arg9[%c8_99, %c0_100] : memref<16x256xf32, #tpu.memory_space<vmem>>, vector<2x256xf32>
    %cst_101 = arith.constant dense<0.000000e+00> : vector<2x256xf32>
    %294 = tpu.matmul %290, %0, %cst_101 {dimension_numbers = #tpu.dot_dimension_numbers<[1], [0], [0], [1], [0, 0, 1, 1], [], []>} : vector<2x64xf32>, vector<64x256xf32>, vector<2x256xf32> -> vector<2x256xf32>
    %295 = arith.addf %293, %294 : vector<2x256xf32>
    %296 = math.tanh %295 : vector<2x256xf32>
    %297 = vector.extract_strided_slice %296 {offsets = [0, 0], sizes = [2, 192], strides = [1, 1]} : vector<2x256xf32> to vector<2x192xf32>
    %cst_102 = arith.constant 5.000000e-01 : f32
    %298 = vector.broadcast %cst_102 : f32 to vector<2x192xf32>
    %299 = arith.mulf %298, %297 : vector<2x192xf32>
    %cst_103 = arith.constant 5.000000e-01 : f32
    %300 = vector.broadcast %cst_103 : f32 to vector<2x192xf32>
    %301 = arith.addf %299, %300 : vector<2x192xf32>
    %302 = vector.extract_strided_slice %301 {offsets = [0, 0], sizes = [2, 64], strides = [1, 1]} : vector<2x192xf32> to vector<2x64xf32>
    %303 = vector.extract_strided_slice %301 {offsets = [0, 64], sizes = [2, 64], strides = [1, 1]} : vector<2x192xf32> to vector<2x64xf32>
    %304 = vector.extract_strided_slice %301 {offsets = [0, 128], sizes = [2, 64], strides = [1, 1]} : vector<2x192xf32> to vector<2x64xf32>
    %305 = vector.extract_strided_slice %296 {offsets = [0, 192], sizes = [2, 64], strides = [1, 1]} : vector<2x256xf32> to vector<2x64xf32>
    %306 = arith.mulf %303, %288 : vector<2x64xf32>
    %307 = arith.mulf %302, %305 : vector<2x64xf32>
    %308 = arith.addf %306, %307 : vector<2x64xf32>
    %309 = math.tanh %308 : vector<2x64xf32>
    %310 = arith.mulf %304, %309 : vector<2x64xf32>
    %311 = vector.extract_strided_slice %310 {offsets = [0, 32], sizes = [2, 32], strides = [1, 1]} : vector<2x64xf32> to vector<2x32xf32>
    %c6_104 = arith.constant 6 : index
    %c0_105 = arith.constant 0 : index
    %312 = vector.load %arg6[%c6_104, %c0_105] : memref<16x32xf32, #tpu.memory_space<vmem>>, vector<2x32xf32>
    tpu.vector_store %arg6[%c6_104, %c0_105], %311 {strides = array<i32>} : memref<16x32xf32, #tpu.memory_space<vmem>>, vector<2x32xf32>,
    %c10_106 = arith.constant 10 : index
    %c0_107 = arith.constant 0 : index
    %313 = vector.load %arg9[%c10_106, %c0_107] : memref<16x256xf32, #tpu.memory_space<vmem>>, vector<2x256xf32>
    %cst_108 = arith.constant dense<0.000000e+00> : vector<2x256xf32>
    %314 = tpu.matmul %310, %0, %cst_108 {dimension_numbers = #tpu.dot_dimension_numbers<[1], [0], [0], [1], [0, 0, 1, 1], [], []>} : vector<2x64xf32>, vector<64x256xf32>, vector<2x256xf32> -> vector<2x256xf32>
    %315 = arith.addf %313, %314 : vector<2x256xf32>
    %316 = math.tanh %315 : vector<2x256xf32>
    %317 = vector.extract_strided_slice %316 {offsets = [0, 0], sizes = [2, 192], strides = [1, 1]} : vector<2x256xf32> to vector<2x192xf32>
    %cst_109 = arith.constant 5.000000e-01 : f32
    %318 = vector.broadcast %cst_109 : f32 to vector<2x192xf32>
    %319 = arith.mulf %318, %317 : vector<2x192xf32>
    %cst_110 = arith.constant 5.000000e-01 : f32
    %320 = vector.broadcast %cst_110 : f32 to vector<2x192xf32>
    %321 = arith.addf %319, %320 : vector<2x192xf32>
    %322 = vector.extract_strided_slice %321 {offsets = [0, 0], sizes = [2, 64], strides = [1, 1]} : vector<2x192xf32> to vector<2x64xf32>
    %323 = vector.extract_strided_slice %321 {offsets = [0, 64], sizes = [2, 64], strides = [1, 1]} : vector<2x192xf32> to vector<2x64xf32>
    %324 = vector.extract_strided_slice %321 {offsets = [0, 128], sizes = [2, 64], strides = [1, 1]} : vector<2x192xf32> to vector<2x64xf32>
    %325 = vector.extract_strided_slice %316 {offsets = [0, 192], sizes = [2, 64], strides = [1, 1]} : vector<2x256xf32> to vector<2x64xf32>
    %326 = arith.mulf %323, %308 : vector<2x64xf32>
    %327 = arith.mulf %322, %325 : vector<2x64xf32>
    %328 = arith.addf %326, %327 : vector<2x64xf32>
    %329 = math.tanh %328 : vector<2x64xf32>
    %330 = arith.mulf %324, %329 : vector<2x64xf32>
    %331 = vector.extract_strided_slice %330 {offsets = [0, 32], sizes = [2, 32], strides = [1, 1]} : vector<2x64xf32> to vector<2x32xf32>
    %c8_111 = arith.constant 8 : index
    %c0_112 = arith.constant 0 : index
    %332 = vector.load %arg6[%c8_111, %c0_112] : memref<16x32xf32, #tpu.memory_space<vmem>>, vector<2x32xf32>
    tpu.vector_store %arg6[%c8_111, %c0_112], %331 {strides = array<i32>} : memref<16x32xf32, #tpu.memory_space<vmem>>, vector<2x32xf32>,
    %c12_113 = arith.constant 12 : index
    %c0_114 = arith.constant 0 : index
    %333 = vector.load %arg9[%c12_113, %c0_114] : memref<16x256xf32, #tpu.memory_space<vmem>>, vector<2x256xf32>
    %cst_115 = arith.constant dense<0.000000e+00> : vector<2x256xf32>
    %334 = tpu.matmul %330, %0, %cst_115 {dimension_numbers = #tpu.dot_dimension_numbers<[1], [0], [0], [1], [0, 0, 1, 1], [], []>} : vector<2x64xf32>, vector<64x256xf32>, vector<2x256xf32> -> vector<2x256xf32>
    %335 = arith.addf %333, %334 : vector<2x256xf32>
    %336 = math.tanh %335 : vector<2x256xf32>
    %337 = vector.extract_strided_slice %336 {offsets = [0, 0], sizes = [2, 192], strides = [1, 1]} : vector<2x256xf32> to vector<2x192xf32>
    %cst_116 = arith.constant 5.000000e-01 : f32
    %338 = vector.broadcast %cst_116 : f32 to vector<2x192xf32>
    %339 = arith.mulf %338, %337 : vector<2x192xf32>
    %cst_117 = arith.constant 5.000000e-01 : f32
    %340 = vector.broadcast %cst_117 : f32 to vector<2x192xf32>
    %341 = arith.addf %339, %340 : vector<2x192xf32>
    %342 = vector.extract_strided_slice %341 {offsets = [0, 0], sizes = [2, 64], strides = [1, 1]} : vector<2x192xf32> to vector<2x64xf32>
    %343 = vector.extract_strided_slice %341 {offsets = [0, 64], sizes = [2, 64], strides = [1, 1]} : vector<2x192xf32> to vector<2x64xf32>
    %344 = vector.extract_strided_slice %341 {offsets = [0, 128], sizes = [2, 64], strides = [1, 1]} : vector<2x192xf32> to vector<2x64xf32>
    %345 = vector.extract_strided_slice %336 {offsets = [0, 192], sizes = [2, 64], strides = [1, 1]} : vector<2x256xf32> to vector<2x64xf32>
    %346 = arith.mulf %343, %328 : vector<2x64xf32>
    %347 = arith.mulf %342, %345 : vector<2x64xf32>
    %348 = arith.addf %346, %347 : vector<2x64xf32>
    %349 = math.tanh %348 : vector<2x64xf32>
    %350 = arith.mulf %344, %349 : vector<2x64xf32>
    %351 = vector.extract_strided_slice %350 {offsets = [0, 32], sizes = [2, 32], strides = [1, 1]} : vector<2x64xf32> to vector<2x32xf32>
    %c10_118 = arith.constant 10 : index
    %c0_119 = arith.constant 0 : index
    %352 = vector.load %arg6[%c10_118, %c0_119] : memref<16x32xf32, #tpu.memory_space<vmem>>, vector<2x32xf32>
    tpu.vector_store %arg6[%c10_118, %c0_119], %351 {strides = array<i32>} : memref<16x32xf32, #tpu.memory_space<vmem>>, vector<2x32xf32>,
    %c14_120 = arith.constant 14 : index
    %c0_121 = arith.constant 0 : index
    %353 = vector.load %arg9[%c14_120, %c0_121] : memref<16x256xf32, #tpu.memory_space<vmem>>, vector<2x256xf32>
    %cst_122 = arith.constant dense<0.000000e+00> : vector<2x256xf32>
    %354 = tpu.matmul %350, %0, %cst_122 {dimension_numbers = #tpu.dot_dimension_numbers<[1], [0], [0], [1], [0, 0, 1, 1], [], []>} : vector<2x64xf32>, vector<64x256xf32>, vector<2x256xf32> -> vector<2x256xf32>
    %355 = arith.addf %353, %354 : vector<2x256xf32>
    %356 = math.tanh %355 : vector<2x256xf32>
    %357 = vector.extract_strided_slice %356 {offsets = [0, 0], sizes = [2, 192], strides = [1, 1]} : vector<2x256xf32> to vector<2x192xf32>
    %cst_123 = arith.constant 5.000000e-01 : f32
    %358 = vector.broadcast %cst_123 : f32 to vector<2x192xf32>
    %359 = arith.mulf %358, %357 : vector<2x192xf32>
    %cst_124 = arith.constant 5.000000e-01 : f32
    %360 = vector.broadcast %cst_124 : f32 to vector<2x192xf32>
    %361 = arith.addf %359, %360 : vector<2x192xf32>
    %362 = vector.extract_strided_slice %361 {offsets = [0, 0], sizes = [2, 64], strides = [1, 1]} : vector<2x192xf32> to vector<2x64xf32>
    %363 = vector.extract_strided_slice %361 {offsets = [0, 64], sizes = [2, 64], strides = [1, 1]} : vector<2x192xf32> to vector<2x64xf32>
    %364 = vector.extract_strided_slice %361 {offsets = [0, 128], sizes = [2, 64], strides = [1, 1]} : vector<2x192xf32> to vector<2x64xf32>
    %365 = vector.extract_strided_slice %356 {offsets = [0, 192], sizes = [2, 64], strides = [1, 1]} : vector<2x256xf32> to vector<2x64xf32>
    %366 = arith.mulf %363, %348 : vector<2x64xf32>
    %367 = arith.mulf %362, %365 : vector<2x64xf32>
    %368 = arith.addf %366, %367 : vector<2x64xf32>
    %369 = math.tanh %368 : vector<2x64xf32>
    %370 = arith.mulf %364, %369 : vector<2x64xf32>
    %371 = vector.extract_strided_slice %370 {offsets = [0, 32], sizes = [2, 32], strides = [1, 1]} : vector<2x64xf32> to vector<2x32xf32>
    %c12_125 = arith.constant 12 : index
    %c0_126 = arith.constant 0 : index
    %372 = vector.load %arg6[%c12_125, %c0_126] : memref<16x32xf32, #tpu.memory_space<vmem>>, vector<2x32xf32>
    tpu.vector_store %arg6[%c12_125, %c0_126], %371 {strides = array<i32>} : memref<16x32xf32, #tpu.memory_space<vmem>>, vector<2x32xf32>,
    %cst_127 = arith.constant dense<0.000000e+00> : vector<2x256xf32>
    %373 = tpu.matmul %370, %0, %cst_127 {dimension_numbers = #tpu.dot_dimension_numbers<[1], [0], [0], [1], [0, 0, 1, 1], [], []>} : vector<2x64xf32>, vector<64x256xf32>, vector<2x256xf32> -> vector<2x256xf32>
    %374 = vector.broadcast %1 : vector<1x256xf32> to vector<2x256xf32>
    %375 = arith.addf %374, %373 : vector<2x256xf32>
    %376 = math.tanh %375 : vector<2x256xf32>
    %377 = vector.extract_strided_slice %376 {offsets = [0, 0], sizes = [2, 192], strides = [1, 1]} : vector<2x256xf32> to vector<2x192xf32>
    %cst_128 = arith.constant 5.000000e-01 : f32
    %378 = vector.broadcast %cst_128 : f32 to vector<2x192xf32>
    %379 = arith.mulf %378, %377 : vector<2x192xf32>
    %cst_129 = arith.constant 5.000000e-01 : f32
    %380 = vector.broadcast %cst_129 : f32 to vector<2x192xf32>
    %381 = arith.addf %379, %380 : vector<2x192xf32>
    %382 = vector.extract_strided_slice %381 {offsets = [0, 0], sizes = [2, 64], strides = [1, 1]} : vector<2x192xf32> to vector<2x64xf32>
    %383 = vector.extract_strided_slice %381 {offsets = [0, 64], sizes = [2, 64], strides = [1, 1]} : vector<2x192xf32> to vector<2x64xf32>
    %384 = vector.extract_strided_slice %381 {offsets = [0, 128], sizes = [2, 64], strides = [1, 1]} : vector<2x192xf32> to vector<2x64xf32>
    %385 = vector.extract_strided_slice %376 {offsets = [0, 192], sizes = [2, 64], strides = [1, 1]} : vector<2x256xf32> to vector<2x64xf32>
    %386 = arith.mulf %383, %368 : vector<2x64xf32>
    %387 = arith.mulf %382, %385 : vector<2x64xf32>
    %388 = arith.addf %386, %387 : vector<2x64xf32>
    %389 = math.tanh %388 : vector<2x64xf32>
    %390 = arith.mulf %384, %389 : vector<2x64xf32>
    %c32_i32_130 = arith.constant 32 : i32
    %391 = vector.broadcast %c32_i32_130 : i32 to vector<2x64xi32>
    %392 = arith.cmpi sge, %5, %391 : vector<2x64xi32>
    %c64_i32_131 = arith.constant 64 : i32
    %393 = vector.broadcast %c64_i32_131 : i32 to vector<2x64xi32>
    %394 = arith.cmpi slt, %5, %393 : vector<2x64xi32>
    %395 = arith.andi %392, %394 : vector<2x64xi1>
    %396 = arith.select %395, %390, %370 : vector<2x64xi1>, vector<2x64xf32>
    %397 = arith.select %395, %388, %368 : vector<2x64xi1>, vector<2x64xf32>
    %398 = vector.extract_strided_slice %396 {offsets = [0, 32], sizes = [2, 32], strides = [1, 1]} : vector<2x64xf32> to vector<2x32xf32>
    %c14_132 = arith.constant 14 : index
    %c0_133 = arith.constant 0 : index
    %399 = vector.load %arg6[%c14_132, %c0_133] : memref<16x32xf32, #tpu.memory_space<vmem>>, vector<2x32xf32>
    tpu.vector_store %arg6[%c14_132, %c0_133], %398 {strides = array<i32>} : memref<16x32xf32, #tpu.memory_space<vmem>>, vector<2x32xf32>,
    %c0_134 = arith.constant 0 : index
    %c0_135 = arith.constant 0 : index
    %400 = vector.load %arg7[%c0_134, %c0_135] : memref<2x64xf32, #tpu.memory_space<vmem>>, vector<2x64xf32>
    tpu.vector_store %arg7[%c0_134, %c0_135], %396 {strides = array<i32>} : memref<2x64xf32, #tpu.memory_space<vmem>>, vector<2x64xf32>,
    %c0_136 = arith.constant 0 : index
    %c0_137 = arith.constant 0 : index
    %401 = vector.load %arg8[%c0_136, %c0_137] : memref<2x64xf32, #tpu.memory_space<vmem>>, vector<2x64xf32>
    tpu.vector_store %arg8[%c0_136, %c0_137], %397 {strides = array<i32>} : memref<2x64xf32, #tpu.memory_space<vmem>>, vector<2x64xf32>,
    return
  }
}

</mosaic_0001>

<bundles_post_ra>
// kernel: rnn_forward.1
= control target key start
LH: loop header
LB: loop body
LE: loop exit
PB: predicated region body
PF: predicated region fallthrough
CT: control target
= control target key end

     0   :  { %14 = vsyncpa [#allocation5], 0  ;;  %s2515_s27 = smov [#allocation4]   ;;  %s3272_s0 = inlined_call_operand.vmem [shape: f32[16,32], index: 0, kind: input, shape index: {}]   ;;  %s3273_s1 = inlined_call_operand.vmem [shape: f32[32,256], index: 1, kind: input, shape index: {}]   ;;  %s3274_s2 = inlined_call_operand.hbm [shape: f32[64,256], index: 2, kind: input, shape index: {}]   ;;  %s3275_s3 = inlined_call_operand.vmem [shape: f32[1,256], index: 3, kind: input, shape index: {}]   ;;  %s3276_s4 = inlined_call_operand.vmem [shape: f32[2,64], index: 4, kind: input, shape index: {}]   ;;  %s3277_s5 = inlined_call_operand.vmem [shape: f32[2,64], index: 5, kind: input, shape index: {}]   ;;  %s3278_s6 = inlined_call_operand.vmem [shape: f32[16,32], index: 6, kind: output, shape index: {0}]   ;;  %s3279_s7 = inlined_call_operand.vmem [shape: f32[2,64], index: 7, kind: output, shape index: {1}]   ;;  %s3280_s8 = inlined_call_operand.vmem [shape: f32[2,64], index: 8, kind: output, shape index: {2}]  }
   0x1   :  { %s24_s28 = sshll.u32 %s2515_s27, 4  ;;  %s25_s28 = int_to_ptr.vmem [resolvable:$true] %s24_s28 }
   0x2   :  { %s2501_s29 = scalar_lea.vmem %s25_s28, 2048  ;;  %p2506_p1 = scmp.lt.s32.totalorder %s25_s28, %s25_s28 }
   0x3   :  { %p2502_p0 = scmp.ne.s32.totalorder %s25_s28, %s2501_s29  ;;  %p2507_p2 = scmp.lt.s32.totalorder %s2501_s29, %s2501_s29 }
   0x5   :  { %p2508_p3 = por %p2507_p2, %p2506_p1 }
   0x7   :  { %p2509_p4 = pnand %p2508_p3, %p2502_p0 }
   0x9   :  { %2512 = shalt.err (!%p2509_p4)
}
   0xa   :  { %s2516_s30 = smov 256   ;;  %s2517_s9 = smov 16  }
   0xb   :  { %30 = dma.hbm_to_vmem [thread:$0]  %s3274_s2, 2048, %s25_s28, [#allocation5], %s2516_s30, %s2516_s30, %s2517_s9  }
   0xc   :  { %2513 = dma.done.wait [#allocation5], 2048  }
   0xd   :  { %2514 = vsyncadd [#allocation5], 4294965248  ;;  %v2518_v0 = vmov 0.0   ;;  %v2574_v1 = vld [vmem:[%s3273_s1 + $0x38] sm:$0xff]  ;;  %v2579_v2 = vld [vmem:[%s3273_s1 + $0x30] sm:$0xff]  ;;  %vm82_vm0 = vcmask 261120   ;;  %v67_v28 = vlaneseq }
   0xe   :  { %153 = vmatprep.mubr.f32.mxu1 %v2518_v0  ;;  %354 = vmatprep.mubr.f32.mxu0 %v2518_v0  ;;  %v2584_v3 = vld [vmem:[%s3273_s1 + $0x28] sm:$0xff]  ;;  %v2590_v4 = vld [vmem:[%s3273_s1 + $0x20] sm:$0xff]  ;;  %v2596_v5 = vld [vmem:[%s3273_s1 + $0x18] sm:$0xff]  ;;  %vm172_vm1 = vcmask 523264   ;;  %vm401_vm3 = vcmask 257026   ;;  %vm633_vm4 = vcmask 261126  }
   0xf   :  { %113 = vmatprep.subr.mxu1 %v2574_v1  ;;  %v2602_v6 = vld [vmem:[%s3273_s1 + $0x10] sm:$0xff]  ;;  %v2604_v7 = vld [vmem:[#allocation4 + $0x78] sm:$0xff]  ;;  %v2612_v9 = vld [vmem:[#allocation4 + $0x70] sm:$0xff]  ;;  %v73_v29 = vshrl.u32 %v67_v28, 7  ;;  %v2738_v61 = vand.u32 127, %v67_v28  ;;  %vm517_vm8 = vcmask 259076  }
  0x10   :  { %114 = vmatpush1.msra.mxu1 %v2579_v2  ;;  %v2610_v8 = vld [vmem:[%s3273_s1 + $0x8] sm:$0xff]  ;;  %306 = vmatprep.subr.mxu0 %v2604_v7  ;;  %v2619_v10 = vld [vmem:[%s3273_s1] sm:$0xff]  ;;  %v2621_v11 = vld [vmem:[#allocation4 + $0x68] sm:$0xff]  ;;  %vm743_vm9 = vcmask 254976   ;;  %vm2325_vm10 = vcmask 517120  }
  0x11   :  { %115 = vmatprep.subr.mxu1 %v2584_v3  ;;  %307 = vmatpush1.msra.mxu0 %v2612_v9  ;;  %v69_v12 = vld [vmem:[%s3272_s0] sm:$0xff]  ;;  %v2628_v13 = vld [vmem:[#allocation4 + $0x60] sm:$0xff]  ;;  %v2632_v14 = vld [vmem:[#allocation4 + $0x58] sm:$0xff]  ;;  %v74_v30 = vsub.s32 0, %v73_v29  ;;  %v78_v32 = vsub.s32 1, %v73_v29  ;;  %vm277_vm2 = vcmp.lt.s32.totalorder %v2738_v61, 32 }
  0x12   :  { %116 = vmatpush1.msra.mxu1 %v2590_v4  ;;  %308 = vmatprep.subr.mxu0 %v2621_v11  ;;  %v2640_v15 = vld [vmem:[#allocation4 + $0x50] sm:$0xff]  ;;  %v70_v16 = vld [vmem:[%s3272_s0 + $0x8] sm:$0xff]  ;;  %v2647_v17 = vld [vmem:[#allocation4 + $0x48] sm:$0xff]  ;;  %vm1191_vm5 = vcmp.ge.s32.totalorder %v2738_v61, 32  ;;  %vm1192_vm6 = vcmp.lt.s32.totalorder %v2738_v61, 64 }
  0x13   :  { %117 = vmatprep.subr.mxu1 %v2596_v5  ;;  %309 = vmatpush1.msra.mxu0 %v2628_v13  ;;  %v2653_v18 = vld [vmem:[#allocation4 + $0x40] sm:$0xff]  ;;  %v2657_v19 = vld [vmem:[#allocation4 + $0x38] sm:$0xff]  ;;  %v2661_v20 = vld [vmem:[#allocation4 + $0x30] sm:$0xff] }
  0x14   :  { %118 = vmatpush1.msra.mxu1 %v2602_v6  ;;  %310 = vmatprep.subr.mxu0 %v2632_v14  ;;  %v2665_v21 = vld [vmem:[#allocation4 + $0x28] sm:$0xff]  ;;  %v2669_v22 = vld [vmem:[#allocation4 + $0x20] sm:$0xff]  ;;  %v2673_v23 = vld [vmem:[#allocation4 + $0x18] sm:$0xff] }
  0x15   :  { %119 = vmatprep.subr.mxu1 %v2610_v8  ;;  %311 = vmatpush1.msra.mxu0 %v2640_v15  ;;  %v2677_v24 = vld [vmem:[#allocation4 + $0x10] sm:$0xff]  ;;  %v2681_v25 = vld [vmem:[#allocation4 + $0x8] sm:$0xff]  ;;  %v2685_v26 = vld [vmem:[#allocation4] sm:$0xff] }
  0x16   :  { %120 = vmatpush1.msra.mxu1 %v2619_v10  ;;  %312 = vmatprep.subr.mxu0 %v2647_v17  ;;  %v2692_v27 = vld [vmem:[%s3276_s4] sm:$0x3]  ;;  %vm2957_vm7 = vmand %vm1191_vm5, %vm1192_vm6 }
  0x17   :  { %2341 = vmatmul.mubr.msk.f32.vlgmr.msra.gmra.mxu1 %vm82_vm0, %v69_v12  ;;  %192 = vmatprep.subr.mxu1 %v2604_v7  ;;  %v56_v31 = vld [vmem:[%s3275_s3] sm:$0x3]  ;;  %s2519_s3 = smov 64  }
  0x18   :  { %193 = vmatpush1.msra.mxu1 %v2612_v9  ;;  %159 = vmatprep.mubr.f32.mxu1 %v2518_v0  ;;  %v2722_v33 = vrot.slane %v56_v31, %v74_v30  ;;  %v2724_v34 = vrot.slane %v56_v31, %v78_v32  ;;  %v66_v48 = vld [vmem:[%s3277_s5] sm:$0x3]  ;;  %s2520_s5 = smov 96  }
  0x19   :  { %194 = vmatprep.subr.mxu1 %v2621_v11  ;;  %313 = vmatpush1.msra.mxu0 %v2653_v18 }
  0x1a   :  { %195 = vmatpush1.msra.mxu1 %v2628_v13  ;;  %314 = vmatprep.subr.mxu0 %v2657_v19 }
  0x1b   :  { %196 = vmatprep.subr.mxu1 %v2632_v14  ;;  %2342 = vmatmul.mubr.msk.f32.gmra.mxu1 %vm82_vm0, %v70_v16 }
  0x1c   :  { %197 = vmatpush1.msra.mxu1 %v2640_v15  ;;  %240 = vmatprep.mubr.f32.mxu1 %v2518_v0 }
  0x1d   :  { %198 = vmatprep.subr.mxu1 %v2647_v17  ;;  %315 = vmatpush1.msra.mxu0 %v2661_v20 }
  0x1e   :  { %199 = vmatpush1.msra.mxu1 %v2653_v18  ;;  %316 = vmatprep.subr.mxu0 %v2665_v21 }
  0x1f   :  { %200 = vmatprep.subr.mxu1 %v2657_v19  ;;  %317 = vmatpush1.msra.mxu0 %v2669_v22 }
  0x20   :  { %201 = vmatpush1.msra.mxu1 %v2661_v20  ;;  %318 = vmatprep.subr.mxu0 %v2673_v23 }
  0x21   :  { %202 = vmatprep.subr.mxu1 %v2665_v21  ;;  %319 = vmatpush1.msra.mxu0 %v2677_v24 }
  0x22   :  { %203 = vmatpush1.msra.mxu1 %v2669_v22  ;;  %320 = vmatprep.subr.mxu0 %v2681_v25 }
  0x23   :  { %204 = vmatprep.subr.mxu1 %v2673_v23  ;;  %321 = vmatpush1.msra.mxu0 %v2685_v26 }
  0x24   :  { %205 = vmatpush1.msra.mxu1 %v2677_v24  ;;  %540 = vmatprep.subr.mxu0 %v2604_v7 }
  0x25   :  { %206 = vmatprep.subr.mxu1 %v2681_v25 }
  0x26   :  { %207 = vmatpush1.msra.mxu1 %v2685_v26 }
  0x27   :  { %2343 = vmatmul.mubr.msk.f32.vlgmr.msra.gmra.mxu1 %vm172_vm1, %v2692_v27  ;;  %424 = vmatprep.subr.mxu1 %v2604_v7 }
  0x28   :  { %425 = vmatpush1.msra.mxu1 %v2612_v9  ;;  %472 = vmatprep.mubr.f32.mxu1 %v2518_v0 }
  0x29   :  { %426 = vmatprep.subr.mxu1 %v2621_v11 }
  0x2a   :  { %427 = vmatpush1.msra.mxu1 %v2628_v13 }
  0x2b   :  { %428 = vmatprep.subr.mxu1 %v2632_v14 }
  0x2c   :  { %429 = vmatpush1.msra.mxu1 %v2640_v15 }
  0x2d   :  { %430 = vmatprep.subr.mxu1 %v2647_v17 }
  0x2e   :  { %431 = vmatpush1.msra.mxu1 %v2653_v18 }
  0x2f   :  { %432 = vmatprep.subr.mxu1 %v2657_v19 }
  0x30   :  { %433 = vmatpush1.msra.mxu1 %v2661_v20 }
  0x31   :  { %434 = vmatprep.subr.mxu1 %v2665_v21 }
  0x32   :  { %435 = vmatpush1.msra.mxu1 %v2669_v22 }
  0x33   :  { %436 = vmatprep.subr.mxu1 %v2673_v23 }
  0x34   :  { %437 = vmatpush1.msra.mxu1 %v2677_v24 }
  0x35   :  { %438 = vmatprep.subr.mxu1 %v2681_v25 }
  0x36   :  { %439 = vmatpush1.msra.mxu1 %v2685_v26 }
  0x37   :  { %656 = vmatprep.subr.mxu1 %v2604_v7 }
  0xd7   :  { %v155_v35 = vpop.f32.mrf.mxu1 }
  0xd8   :  { %v156_v36 = vadd.f32 %v155_v35, %v2722_v33 }
  0xd9   :  { %v157_v37 = vpop.f32.mrf.mxu1 }
  0xda   :  { %166 = vst [vmem:[#allocation2 + $0x10] sm:$0xff] %v156_v36  ;;  %v158_v38 = vadd.f32 %v157_v37, %v2724_v34 }
  0xdb   :  { %v161_v39 = vpop.f32.mrf.mxu1 }
  0xdc   :  { %167 = vst [vmem:[#allocation2] sm:$0xff] %v158_v38  ;;  %v162_v40 = vadd.f32 %v161_v39, %v2722_v33 }
  0xdd   :  { %v163_v41 = vpop.f32.mrf.mxu1 }
  0xde   :  { %168 = vst [vmem:[#allocation2 + $0x18] sm:$0xff] %v162_v40  ;;  %v164_v42 = vadd.f32 %v163_v41, %v2724_v34 }
  0xe0   :  { %169 = vst [vmem:[#allocation2 + $0x8] sm:$0xff] %v164_v42 }
  0xe1   :  { %v170_v49 = vld [vmem:[#allocation2 + $0x10] sm:$0x3]  ;;  %v285_v40 = vld [vmem:[#allocation2 + $0x10] sm:$0xc] }
  0xe3   :  { %v171_v44 = vld [vmem:[#allocation2] sm:$0x3]  ;;  %v286_v36 = vld [vmem:[#allocation2] sm:$0xc] }
  0xe7   :  { %v242_v43 = vpop.f32.mrf.mxu1 }
  0xe8   :  { %v247_v50 = vadd.f32 %v242_v43, %v170_v49 }
  0xe9   :  { %v244_v45 = vpop.f32.mrf.mxu1 }
  0xea   :  { %v248_v46 = vadd.f32 %v244_v45, %v171_v44 }
  0xec   :  { %2369 = vtanh.f32 %v248_v46 }
  0xed   :  { %2371 = vtanh.f32 %v247_v50 }
  0xf9   :  { %v2370_v47 = vpop.eup %2369 }
  0xfa   :  { %261 = vrot.lane.b32.xlu0 %v2370_v47, %s2519_s3  ;;  %v2372_v51 = vpop.eup %2371  ;;  %v252_v16 = vmul.f32 0.5, %v2370_v47 }
  0xfb   :  { %v251_v52 = vmul.f32 0.5, %v2372_v51 }
  0xfc   :  { %v254_v29 = vadd.f32 0.5, %v252_v16  ;;  %v403_v16 = vld [vmem:[#allocation2 + $0x10] sm:$0x30] }
  0xfd   :  { %v253_v53 = vadd.f32 0.5, %v251_v52 }
  0xfe   :  { %256 = vrot.lane.b32.xlu0 %v66_v48, %s2519_s3 }
 0x16c   :  { %v262_v54 = vpop.permute.xlu0 %261 }
 0x16d   :  { %v264_v55 = vmul.f32 %v262_v54, %v253_v53 }
 0x16f   :  { %266 = vrot.lane.b32.xlu1 %v264_v55, %s2519_s3 }
 0x170   :  { %v257_v56 = vpop.permute.xlu0 %256 }
 0x171   :  { %v259_v57 = vmul.f32 %v257_v56, %v253_v53 }
 0x1e1   :  { %v267_v58 = vpop.permute.xlu1 %266 }
 0x1e2   :  { %v269_v59 = vadd.f32 %v267_v58, %v259_v57 }
 0x1e4   :  { %2373 = vtanh.f32 %v269_v59  ;;  %281 = vrot.lane.b32.xlu0 %v269_v59, %s2519_s3 }
 0x1f1   :  { %v2374_v60 = vpop.eup %2373 }
 0x1f2   :  { %272 = vrot.lane.b32.xlu1 %v2374_v60, %s2519_s3  ;;  %v404_v60 = vld [vmem:[#allocation2] sm:$0x30] }
 0x256   :  { %v282_v62 = vpop.permute.xlu0 %281 }
 0x257   :  { %v284_v63 = vsel %vm277_vm2, %v282_v62, %v66_v48 }
 0x258   :  { %v376_v12 = vrot.slane %v284_v63, 6 }
 0x25a   :  { %377 = vrot.lane.b32.xlu0 %v376_v12, %s2519_s3 }
 0x264   :  { %v273_v30 = vpop.permute.xlu1 %272 }
 0x265   :  { %v275_v31 = vmul.f32 %v273_v30, %v254_v29 }
 0x267   :  { %v279_v32 = vsel %vm277_vm2, %v275_v31, %v2692_v27 }
 0x268   :  { %2344 = vmatmul.mubr.msk.f32.vlgmr.msra.gmra.mxu0 %vm172_vm1, %v279_v32 }
 0x269   :  { %541 = vmatpush1.msra.mxu0 %v2612_v9  ;;  %588 = vmatprep.mubr.f32.mxu0 %v2518_v0 }
 0x26a   :  { %542 = vmatprep.subr.mxu0 %v2621_v11 }
 0x26b   :  { %543 = vmatpush1.msra.mxu0 %v2628_v13 }
 0x26c   :  { %544 = vmatprep.subr.mxu0 %v2632_v14 }
 0x26d   :  { %545 = vmatpush1.msra.mxu0 %v2640_v15 }
 0x26e   :  { %546 = vmatprep.subr.mxu0 %v2647_v17 }
 0x26f   :  { %547 = vmatpush1.msra.mxu0 %v2653_v18 }
 0x270   :  { %548 = vmatprep.subr.mxu0 %v2657_v19 }
 0x271   :  { %549 = vmatpush1.msra.mxu0 %v2661_v20 }
 0x272   :  { %550 = vmatprep.subr.mxu0 %v2665_v21 }
 0x273   :  { %551 = vmatpush1.msra.mxu0 %v2669_v22 }
 0x274   :  { %552 = vmatprep.subr.mxu0 %v2673_v23 }
 0x275   :  { %553 = vmatpush1.msra.mxu0 %v2677_v24 }
 0x276   :  { %554 = vmatprep.subr.mxu0 %v2681_v25 }
 0x277   :  { %555 = vmatpush1.msra.mxu0 %v2685_v26 }
 0x278   :  { %765 = vmatprep.subr.mxu0 %v2604_v7 }
 0x2cc   :  { %v378_v47 = vpop.permute.xlu0 %377 }
 0x328   :  { %v356_v27 = vpop.f32.mrf.mxu0 }
 0x329   :  { %v363_v39 = vrot.slane %v356_v27, 6 }
 0x32a   :  { %v358_v28 = vpop.f32.mrf.mxu0 }
 0x32b   :  { %v364_v35 = vrot.slane %v358_v28, 6  ;;  %v367_v41 = vadd.f32 %v363_v39, %v285_v40 }
 0x32d   :  { %v368_v37 = vadd.f32 %v364_v35, %v286_v36 }
 0x32f   :  { %2375 = vtanh.f32 %v368_v37 }
 0x330   :  { %2377 = vtanh.f32 %v367_v41 }
 0x33c   :  { %v2376_v38 = vpop.eup %2375 }
 0x33d   :  { %382 = vrot.lane.b32.xlu1 %v2376_v38, %s2519_s3  ;;  %v2378_v42 = vpop.eup %2377  ;;  %v372_v52 = vmul.f32 0.5, %v2376_v38 }
 0x33e   :  { %v371_v43 = vmul.f32 0.5, %v2378_v42 }
 0x33f   :  { %v374_v53 = vadd.f32 0.5, %v372_v52  ;;  %v519_v52 = vld [vmem:[#allocation2 + $0x10] sm:$0xc0] }
 0x340   :  { %v373_v44 = vadd.f32 0.5, %v371_v43 }
 0x342   :  { %v380_v48 = vmul.f32 %v378_v47, %v373_v44 }
 0x3af   :  { %v383_v45 = vpop.permute.xlu1 %382 }
 0x3b0   :  { %v385_v46 = vmul.f32 %v383_v45, %v373_v44 }
 0x3b2   :  { %387 = vrot.lane.b32.xlu1 %v385_v46, %s2519_s3 }
 0x424   :  { %v388_v49 = vpop.permute.xlu1 %387 }
 0x425   :  { %v390_v50 = vadd.f32 %v388_v49, %v380_v48  ;;  %v520_v48 = vld [vmem:[#allocation2] sm:$0xc0] }
 0x427   :  { %2379 = vtanh.f32 %v390_v50  ;;  %v494_v35 = vrot.slane %v390_v50, 6 }
 0x434   :  { %v2380_v51 = vpop.eup %2379 }
 0x435   :  { %393 = vrot.lane.b32.xlu0 %v2380_v51, %s2519_s3 }
 0x4a7   :  { %v394_v54 = vpop.permute.xlu0 %393 }
 0x4a8   :  { %v2768_v55 = vmul.f32 %v394_v54, %v374_v53 }
 0x4aa   :  { %v405_v56 = vrot.slane %v2768_v55, 2 }
 0x4ac   :  { %2345 = vmatmul.mubr.msk.f32.vlgmr.msra.gmra.mxu1 %vm172_vm1, %v405_v56 }
 0x4ad   :  { %657 = vmatpush1.msra.mxu1 %v2612_v9  ;;  %704 = vmatprep.mubr.f32.mxu1 %v2518_v0 }
 0x4ae   :  { %658 = vmatprep.subr.mxu1 %v2621_v11 }
 0x4af   :  { %659 = vmatpush1.msra.mxu1 %v2628_v13 }
 0x4b0   :  { %660 = vmatprep.subr.mxu1 %v2632_v14 }
 0x4b1   :  { %661 = vmatpush1.msra.mxu1 %v2640_v15 }
 0x4b2   :  { %662 = vmatprep.subr.mxu1 %v2647_v17 }
 0x4b3   :  { %663 = vmatpush1.msra.mxu1 %v2653_v18 }
 0x4b4   :  { %664 = vmatprep.subr.mxu1 %v2657_v19 }
 0x4b5   :  { %665 = vmatpush1.msra.mxu1 %v2661_v20 }
 0x4b6   :  { %666 = vmatprep.subr.mxu1 %v2665_v21 }
 0x4b7   :  { %667 = vmatpush1.msra.mxu1 %v2669_v22 }
 0x4b8   :  { %668 = vmatprep.subr.mxu1 %v2673_v23 }
 0x4b9   :  { %669 = vmatpush1.msra.mxu1 %v2677_v24 }
 0x4ba   :  { %670 = vmatprep.subr.mxu1 %v2681_v25 }
 0x4bb   :  { %671 = vmatpush1.msra.mxu1 %v2685_v26 }
 0x4bc   :  { %880 = vmatprep.subr.mxu1 %v2604_v7 }
 0x56c   :  { %v474_v57 = vpop.f32.mrf.mxu1 }
 0x56d   :  { %v481_v12 = vrot.slane %v474_v57, 4 }
 0x56e   :  { %v476_v58 = vpop.f32.mrf.mxu1 }
 0x56f   :  { %v482_v59 = vrot.slane %v476_v58, 4  ;;  %v485_v29 = vadd.f32 %v481_v12, %v403_v16 }
 0x571   :  { %v486_v62 = vadd.f32 %v482_v59, %v404_v60 }
 0x573   :  { %2381 = vtanh.f32 %v486_v62 }
 0x574   :  { %2383 = vtanh.f32 %v485_v29 }
 0x580   :  { %v2382_v63 = vpop.eup %2381 }
 0x581   :  { %498 = vrot.lane.b32.xlu1 %v2382_v63, %s2519_s3  ;;  %v2384_v30 = vpop.eup %2383  ;;  %v490_v40 = vmul.f32 0.5, %v2382_v63 }
 0x582   :  { %v489_v31 = vmul.f32 0.5, %v2384_v30 }
 0x583   :  { %v492_v41 = vadd.f32 0.5, %v490_v40 }
 0x584   :  { %v491_v32 = vadd.f32 0.5, %v489_v31 }
 0x586   :  { %v496_v36 = vmul.f32 %v494_v35, %v491_v32  ;;  %v636_v35 = vld [vmem:[#allocation2 + $0x8] sm:$0x3] }
 0x5f3   :  { %v499_v27 = vpop.permute.xlu1 %498 }
 0x5f4   :  { %v501_v28 = vmul.f32 %v499_v27, %v491_v32 }
 0x5f6   :  { %503 = vrot.lane.b32.xlu0 %v501_v28, %s2519_s3 }
 0x668   :  { %v504_v37 = vpop.permute.xlu0 %503 }
 0x669   :  { %v506_v38 = vadd.f32 %v504_v37, %v496_v36 }
 0x66b   :  { %2385 = vtanh.f32 %v506_v38  ;;  %v610_v60 = vrot.slane %v506_v38, 6 }
 0x678   :  { %v2386_v39 = vpop.eup %2385 }
 0x679   :  { %509 = vrot.lane.b32.xlu1 %v2386_v39, %s2519_s3  ;;  %v635_v39 = vld [vmem:[#allocation2 + $0x18] sm:$0x3] }
 0x6eb   :  { %v510_v42 = vpop.permute.xlu1 %509 }
 0x6ec   :  { %v2792_v43 = vmul.f32 %v510_v42, %v492_v41 }
 0x6ee   :  { %v521_v44 = vrot.slane %v2792_v43, 4 }
 0x6f0   :  { %2346 = vmatmul.mubr.msk.f32.vlgmr.msra.gmra.mxu0 %vm172_vm1, %v521_v44 }
 0x6f1   :  { %766 = vmatpush1.msra.mxu0 %v2612_v9  ;;  %813 = vmatprep.mubr.f32.mxu0 %v2518_v0 }
 0x6f2   :  { %767 = vmatprep.subr.mxu0 %v2621_v11 }
 0x6f3   :  { %768 = vmatpush1.msra.mxu0 %v2628_v13 }
 0x6f4   :  { %769 = vmatprep.subr.mxu0 %v2632_v14 }
 0x6f5   :  { %770 = vmatpush1.msra.mxu0 %v2640_v15 }
 0x6f6   :  { %771 = vmatprep.subr.mxu0 %v2647_v17 }
 0x6f7   :  { %772 = vmatpush1.msra.mxu0 %v2653_v18 }
 0x6f8   :  { %773 = vmatprep.subr.mxu0 %v2657_v19 }
 0x6f9   :  { %774 = vmatpush1.msra.mxu0 %v2661_v20 }
 0x6fa   :  { %775 = vmatprep.subr.mxu0 %v2665_v21 }
 0x6fb   :  { %776 = vmatpush1.msra.mxu0 %v2669_v22 }
 0x6fc   :  { %777 = vmatprep.subr.mxu0 %v2673_v23 }
 0x6fd   :  { %778 = vmatpush1.msra.mxu0 %v2677_v24 }
 0x6fe   :  { %779 = vmatprep.subr.mxu0 %v2681_v25 }
 0x6ff   :  { %780 = vmatpush1.msra.mxu0 %v2685_v26 }
 0x700   :  { %995 = vmatprep.subr.mxu0 %v2604_v7 }
 0x7b0   :  { %v590_v45 = vpop.f32.mrf.mxu0 }
 0x7b1   :  { %v597_v51 = vrot.slane %v590_v45, 2 }
 0x7b2   :  { %v592_v46 = vpop.f32.mrf.mxu0 }
 0x7b3   :  { %v598_v47 = vrot.slane %v592_v46, 2  ;;  %v601_v53 = vadd.f32 %v597_v51, %v519_v52 }
 0x7b5   :  { %v602_v49 = vadd.f32 %v598_v47, %v520_v48 }
 0x7b7   :  { %2387 = vtanh.f32 %v602_v49 }
 0x7b8   :  { %2389 = vtanh.f32 %v601_v53 }
 0x7c4   :  { %v2388_v50 = vpop.eup %2387 }
 0x7c5   :  { %614 = vrot.lane.b32.xlu0 %v2388_v50, %s2519_s3  ;;  %v2390_v54 = vpop.eup %2389  ;;  %v606_v29 = vmul.f32 0.5, %v2388_v50 }
 0x7c6   :  { %v605_v56 = vmul.f32 0.5, %v2390_v54 }
 0x7c7   :  { %v608_v30 = vadd.f32 0.5, %v606_v29 }
 0x7c8   :  { %v607_v57 = vadd.f32 0.5, %v605_v56 }
 0x7ca   :  { %v612_v62 = vmul.f32 %v610_v60, %v607_v57  ;;  %v746_v60 = vld [vmem:[#allocation2 + $0x8] sm:$0xc] }
 0x837   :  { %v615_v58 = vpop.permute.xlu0 %614 }
 0x838   :  { %v617_v59 = vmul.f32 %v615_v58, %v607_v57 }
 0x83a   :  { %619 = vrot.lane.b32.xlu1 %v617_v59, %s2519_s3 }
 0x8ac   :  { %v620_v63 = vpop.permute.xlu1 %619 }
 0x8ad   :  { %v622_v12 = vadd.f32 %v620_v63, %v612_v62 }
 0x8af   :  { %2391 = vtanh.f32 %v622_v12  ;;  %v720_v47 = vrot.slane %v622_v12, 6 }
 0x8bc   :  { %v2392_v16 = vpop.eup %2391 }
 0x8bd   :  { %625 = vrot.lane.b32.xlu0 %v2392_v16, %s2519_s3  ;;  %v745_v16 = vld [vmem:[#allocation2 + $0x18] sm:$0xc] }
 0x92f   :  { %v626_v31 = vpop.permute.xlu0 %625 }
 0x930   :  { %v2816_v32 = vmul.f32 %v626_v31, %v608_v30 }
 0x932   :  { %v637_v27 = vrot.slane %v2816_v32, 6 }
 0x934   :  { %2347 = vmatmul.mubr.msk.f32.vlgmr.msra.gmra.mxu1 %vm172_vm1, %v637_v27 }
 0x935   :  { %881 = vmatpush1.msra.mxu1 %v2612_v9  ;;  %928 = vmatprep.mubr.f32.mxu1 %v2518_v0 }
 0x936   :  { %882 = vmatprep.subr.mxu1 %v2621_v11 }
 0x937   :  { %883 = vmatpush1.msra.mxu1 %v2628_v13 }
 0x938   :  { %884 = vmatprep.subr.mxu1 %v2632_v14 }
 0x939   :  { %885 = vmatpush1.msra.mxu1 %v2640_v15 }
 0x93a   :  { %886 = vmatprep.subr.mxu1 %v2647_v17 }
 0x93b   :  { %887 = vmatpush1.msra.mxu1 %v2653_v18 }
 0x93c   :  { %888 = vmatprep.subr.mxu1 %v2657_v19 }
 0x93d   :  { %889 = vmatpush1.msra.mxu1 %v2661_v20 }
 0x93e   :  { %890 = vmatprep.subr.mxu1 %v2665_v21 }
 0x93f   :  { %891 = vmatpush1.msra.mxu1 %v2669_v22 }
 0x940   :  { %892 = vmatprep.subr.mxu1 %v2673_v23 }
 0x941   :  { %893 = vmatpush1.msra.mxu1 %v2677_v24 }
 0x942   :  { %894 = vmatprep.subr.mxu1 %v2681_v25 }
 0x943   :  { %895 = vmatpush1.msra.mxu1 %v2685_v26 }
 0x944   :  { %1108 = vmatprep.subr.mxu1 %v2604_v7 }
 0x9f4   :  { %v706_v28 = vpop.f32.mrf.mxu1 }
 0x9f5   :  { %v711_v40 = vadd.f32 %v706_v28, %v635_v39 }
 0x9f6   :  { %v708_v36 = vpop.f32.mrf.mxu1 }
 0x9f7   :  { %v712_v37 = vadd.f32 %v708_v36, %v636_v35 }
 0x9f9   :  { %2393 = vtanh.f32 %v712_v37 }
 0x9fa   :  { %2395 = vtanh.f32 %v711_v40 }
 0xa06   :  { %v2394_v38 = vpop.eup %2393 }
 0xa07   :  { %724 = vrot.lane.b32.xlu1 %v2394_v38, %s2519_s3  ;;  %v2396_v41 = vpop.eup %2395  ;;  %v716_v52 = vmul.f32 0.5, %v2394_v38 }
 0xa08   :  { %v715_v42 = vmul.f32 0.5, %v2396_v41 }
 0xa09   :  { %v718_v53 = vadd.f32 0.5, %v716_v52 }
 0xa0a   :  { %v717_v44 = vadd.f32 0.5, %v715_v42 }
 0xa0c   :  { %v722_v48 = vmul.f32 %v720_v47, %v717_v44 }
 0xa79   :  { %v725_v45 = vpop.permute.xlu1 %724 }
 0xa7a   :  { %v727_v46 = vmul.f32 %v725_v45, %v717_v44 }
 0xa7c   :  { %729 = vrot.lane.b32.xlu0 %v727_v46, %s2519_s3 }
 0xaee   :  { %v730_v49 = vpop.permute.xlu0 %729 }
 0xaef   :  { %v732_v50 = vadd.f32 %v730_v49, %v722_v48  ;;  %v860_v49 = vld [vmem:[#allocation2 + $0x8] sm:$0x30] }
 0xaf1   :  { %2397 = vtanh.f32 %v732_v50 }
 0xafe   :  { %v2398_v51 = vpop.eup %2397 }
 0xaff   :  { %735 = vrot.lane.b32.xlu1 %v2398_v51, %s2519_s3 }
 0xb71   :  { %v736_v54 = vpop.permute.xlu1 %735 }
 0xb72   :  { %v2840_v56 = vmul.f32 %v736_v54, %v718_v53  ;;  %v859_v53 = vld [vmem:[#allocation2 + $0x18] sm:$0x30] }
 0xb74   :  { %2348 = vmatmul.mubr.msk.f32.vlgmr.msra.gmra.mxu0 %vm172_vm1, %v2840_v56 }
 0xb75   :  { %996 = vmatpush1.msra.mxu0 %v2612_v9  ;;  %1043 = vmatprep.mubr.f32.mxu0 %v2518_v0 }
 0xb76   :  { %997 = vmatprep.subr.mxu0 %v2621_v11 }
 0xb77   :  { %998 = vmatpush1.msra.mxu0 %v2628_v13 }
 0xb78   :  { %999 = vmatprep.subr.mxu0 %v2632_v14 }
 0xb79   :  { %1000 = vmatpush1.msra.mxu0 %v2640_v15 }
 0xb7a   :  { %1001 = vmatprep.subr.mxu0 %v2647_v17 }
 0xb7b   :  { %1002 = vmatpush1.msra.mxu0 %v2653_v18 }
 0xb7c   :  { %1003 = vmatprep.subr.mxu0 %v2657_v19 }
 0xb7d   :  { %1004 = vmatpush1.msra.mxu0 %v2661_v20 }
 0xb7e   :  { %1005 = vmatprep.subr.mxu0 %v2665_v21 }
 0xb7f   :  { %1006 = vmatpush1.msra.mxu0 %v2669_v22 }
 0xb80   :  { %1007 = vmatprep.subr.mxu0 %v2673_v23 }
 0xb81   :  { %1008 = vmatpush1.msra.mxu0 %v2677_v24 }
 0xb82   :  { %1009 = vmatprep.subr.mxu0 %v2681_v25 }
 0xb83   :  { %1010 = vmatpush1.msra.mxu0 %v2685_v26 }
 0xb84   :  { %1241 = vmatprep.subr.mxu0 %v2574_v1  ;;  %v835_v1 = vrot.slane %v732_v50, 6 }
 0xc34   :  { %v815_v57 = vpop.f32.mrf.mxu0 }
 0xc35   :  { %v822_v12 = vrot.slane %v815_v57, 6 }
 0xc36   :  { %v817_v58 = vpop.f32.mrf.mxu0 }
 0xc37   :  { %v823_v59 = vrot.slane %v817_v58, 6  ;;  %v826_v29 = vadd.f32 %v822_v12, %v745_v16 }
 0xc39   :  { %v827_v62 = vadd.f32 %v823_v59, %v746_v60 }
 0xc3b   :  { %2399 = vtanh.f32 %v827_v62 }
 0xc3c   :  { %2401 = vtanh.f32 %v826_v29 }
 0xc48   :  { %v2400_v63 = vpop.eup %2399 }
 0xc49   :  { %839 = vrot.lane.b32.xlu0 %v2400_v63, %s2519_s3  ;;  %v2402_v30 = vpop.eup %2401  ;;  %v831_v40 = vmul.f32 0.5, %v2400_v63 }
 0xc4a   :  { %v830_v31 = vmul.f32 0.5, %v2402_v30 }
 0xc4b   :  { %v833_v41 = vadd.f32 0.5, %v831_v40 }
 0xc4c   :  { %v832_v27 = vadd.f32 0.5, %v830_v31 }
 0xc4e   :  { %v837_v36 = vmul.f32 %v835_v1, %v832_v27 }
 0xcbb   :  { %v840_v28 = vpop.permute.xlu0 %839 }
 0xcbc   :  { %v842_v35 = vmul.f32 %v840_v28, %v832_v27 }
 0xcbe   :  { %844 = vrot.lane.b32.xlu1 %v842_v35, %s2519_s3 }
 0xd30   :  { %v845_v37 = vpop.permute.xlu1 %844 }
 0xd31   :  { %v847_v38 = vadd.f32 %v845_v37, %v837_v36 }
 0xd33   :  { %2403 = vtanh.f32 %v847_v38  ;;  %v950_v63 = vrot.slane %v847_v38, 6 }
 0xd40   :  { %v2404_v39 = vpop.eup %2403 }
 0xd41   :  { %850 = vrot.lane.b32.xlu0 %v2404_v39, %s2519_s3 }
 0xdb3   :  { %v851_v42 = vpop.permute.xlu0 %850 }
 0xdb4   :  { %v2864_v44 = vmul.f32 %v851_v42, %v833_v41 }
 0xdb6   :  { %v861_v45 = vrot.slane %v2864_v44, 2 }
 0xdb8   :  { %2349 = vmatmul.mubr.msk.f32.vlgmr.msra.gmra.mxu1 %vm172_vm1, %v861_v45 }
 0xdb9   :  { %1109 = vmatpush1.msra.mxu1 %v2612_v9  ;;  %1156 = vmatprep.mubr.f32.mxu1 %v2518_v0 }
 0xdba   :  { %1110 = vmatprep.subr.mxu1 %v2621_v11 }
 0xdbb   :  { %1111 = vmatpush1.msra.mxu1 %v2628_v13 }
 0xdbc   :  { %1112 = vmatprep.subr.mxu1 %v2632_v14 }
 0xdbd   :  { %1113 = vmatpush1.msra.mxu1 %v2640_v15 }
 0xdbe   :  { %1114 = vmatprep.subr.mxu1 %v2647_v17 }
 0xdbf   :  { %1115 = vmatpush1.msra.mxu1 %v2653_v18 }
 0xdc0   :  { %1116 = vmatprep.subr.mxu1 %v2657_v19 }
 0xdc1   :  { %1117 = vmatpush1.msra.mxu1 %v2661_v20 }
 0xdc2   :  { %1118 = vmatprep.subr.mxu1 %v2665_v21 }
 0xdc3   :  { %1119 = vmatpush1.msra.mxu1 %v2669_v22 }
 0xdc4   :  { %1120 = vmatprep.subr.mxu1 %v2673_v23 }
 0xdc5   :  { %1121 = vmatpush1.msra.mxu1 %v2677_v24 }
 0xdc6   :  { %1122 = vmatprep.subr.mxu1 %v2681_v25 }
 0xdc7   :  { %1123 = vmatpush1.msra.mxu1 %v2685_v26 }
 0xdc8   :  { %1429 = vmatprep.subr.mxu1 %v2604_v7 }
 0xe78   :  { %v930_v46 = vpop.f32.mrf.mxu1 }
 0xe79   :  { %v937_v52 = vrot.slane %v930_v46, 4 }
 0xe7a   :  { %v932_v47 = vpop.f32.mrf.mxu1 }
 0xe7b   :  { %v938_v48 = vrot.slane %v932_v47, 4  ;;  %v941_v54 = vadd.f32 %v937_v52, %v859_v53 }
 0xe7d   :  { %v942_v50 = vadd.f32 %v938_v48, %v860_v49 }
 0xe7f   :  { %2405 = vtanh.f32 %v942_v50 }
 0xe80   :  { %2407 = vtanh.f32 %v941_v54 }
 0xe8c   :  { %v2406_v51 = vpop.eup %2405 }
 0xe8d   :  { %954 = vrot.lane.b32.xlu1 %v2406_v51, %s2519_s3  ;;  %v2408_v57 = vpop.eup %2407  ;;  %v946_v31 = vmul.f32 0.5, %v2406_v51 }
 0xe8e   :  { %v945_v58 = vmul.f32 0.5, %v2408_v57 }
 0xe8f   :  { %v948_v27 = vadd.f32 0.5, %v946_v31 }
 0xe90   :  { %v947_v59 = vadd.f32 0.5, %v945_v58 }
 0xe92   :  { %v952_v12 = vmul.f32 %v950_v63, %v947_v59 }
 0xeff   :  { %v955_v60 = vpop.permute.xlu1 %954 }
 0xf00   :  { %v957_v62 = vmul.f32 %v955_v60, %v947_v59 }
 0xf02   :  { %959 = vrot.lane.b32.xlu0 %v957_v62, %s2519_s3 }
 0xf74   :  { %v960_v16 = vpop.permute.xlu0 %959 }
 0xf75   :  { %v962_v29 = vadd.f32 %v960_v16, %v952_v12 }
 0xf77   :  { %2409 = vtanh.f32 %v962_v29  ;;  %v1065_v45 = vrot.slane %v962_v29, 6 }
 0xf84   :  { %v2410_v30 = vpop.eup %2409 }
 0xf85   :  { %965 = vrot.lane.b32.xlu1 %v2410_v30, %s2519_s3 }
 0xff7   :  { %v966_v28 = vpop.permute.xlu1 %965 }
 0xff8   :  { %v2888_v35 = vmul.f32 %v966_v28, %v948_v27  ;;  %v2974_v28 = vld [vmem:[#allocation4 + $0x70] sm:$0xff] }
 0xffa   :  { %v976_v1 = vrot.slane %v2888_v35, 4 }
 0xffc   :  { %2350 = vmatmul.mubr.msk.f32.vlgmr.msra.gmra.mxu0 %vm172_vm1, %v976_v1  ;;  %v2981_v1 = vld [vmem:[#allocation4 + $0x60] sm:$0xff] }
 0xffd   :  { %1242 = vmatpush1.msra.mxu0 %v2579_v2  ;;  %1281 = vmatprep.mubr.f32.mxu0 %v2518_v0  ;;  %v975_v2 = vld [vmem:[#allocation2 + $0x8] sm:$0xc0] }
 0xffe   :  { %1243 = vmatprep.subr.mxu0 %v2584_v3 }
 0xfff   :  { %1244 = vmatpush1.msra.mxu0 %v2590_v4  ;;  %v974_v4 = vld [vmem:[#allocation2 + $0x18] sm:$0xc0] }
0x1000   :  { %1245 = vmatprep.subr.mxu0 %v2596_v5 }
0x1001   :  { %1246 = vmatpush1.msra.mxu0 %v2602_v6 }
0x1002   :  { %1247 = vmatprep.subr.mxu0 %v2610_v8 }
0x1003   :  { %1248 = vmatpush1.msra.mxu0 %v2619_v10 }
0x1004   :  { %1318 = vmatprep.subr.mxu0 %v2604_v7 }
0x10bc   :  { %v1045_v36 = vpop.f32.mrf.mxu0 }
0x10bd   :  { %v1052_v3 = vrot.slane %v1045_v36, 2  ;;  %v2984_v36 = vld [vmem:[#allocation4 + $0x58] sm:$0xff] }
0x10be   :  { %v1047_v37 = vpop.f32.mrf.mxu0 }
0x10bf   :  { %v1053_v38 = vrot.slane %v1047_v37, 2  ;;  %v1056_v5 = vadd.f32 %v1052_v3, %v974_v4  ;;  %v2987_v37 = vld [vmem:[#allocation4 + $0x50] sm:$0xff]  ;;  %v3002_v3 = vld [vmem:[#allocation4 + $0x28] sm:$0xff]  ;;  %v3005_v4 = vld [vmem:[#allocation4 + $0x20] sm:$0xff] }
0x10c1   :  { %v1057_v39 = vadd.f32 %v1053_v38, %v975_v2  ;;  %v2990_v38 = vld [vmem:[#allocation4 + $0x48] sm:$0xff]  ;;  %v2993_v2 = vld [vmem:[#allocation4 + $0x40] sm:$0xff] }
0x10c3   :  { %2411 = vtanh.f32 %v1057_v39  ;;  %v2996_v39 = vld [vmem:[#allocation4 + $0x38] sm:$0xff] }
0x10c4   :  { %2413 = vtanh.f32 %v1056_v5  ;;  %v3012_v5 = vld [vmem:[#allocation4 + $0x78] sm:$0xff] }
0x10d0   :  { %v2412_v40 = vpop.eup %2411 }
0x10d1   :  { %1069 = vrot.lane.b32.xlu0 %v2412_v40, %s2519_s3  ;;  %v2414_v6 = vpop.eup %2413  ;;  %v1061_v50 = vmul.f32 0.5, %v2412_v40  ;;  %v2999_v40 = vld [vmem:[#allocation4 + $0x30] sm:$0xff] }
0x10d2   :  { %v1060_v41 = vmul.f32 0.5, %v2414_v6 }
0x10d3   :  { %v1063_v51 = vadd.f32 0.5, %v1061_v50 }
0x10d4   :  { %v1062_v8 = vadd.f32 0.5, %v1060_v41 }
0x10d6   :  { %v1067_v46 = vmul.f32 %v1065_v45, %v1062_v8 }
0x1143   :  { %v1070_v42 = vpop.permute.xlu0 %1069 }
0x1144   :  { %v1072_v10 = vmul.f32 %v1070_v42, %v1062_v8 }
0x1146   :  { %1074 = vrot.lane.b32.xlu1 %v1072_v10, %s2519_s3  ;;  %v3047_v10 = vld [vmem:[#allocation4] sm:$0xff] }
0x11b8   :  { %v1075_v47 = vpop.permute.xlu1 %1074 }
0x11b9   :  { %v2903_v48 = vadd.f32 %v1075_v47, %v1067_v46 }
0x11bb   :  { %2415 = vtanh.f32 %v2903_v48 }
0x11c8   :  { %v2416_v49 = vpop.eup %2415 }
0x11c9   :  { %1080 = vrot.lane.b32.xlu0 %v2416_v49, %s2519_s3 }
0x123b   :  { %v1081_v52 = vpop.permute.xlu0 %1080 }
0x123c   :  { %v2907_v53 = vmul.f32 %v1081_v52, %v1063_v51 }
0x123e   :  { %v1089_v54 = vrot.slane %v2907_v53, 6 }
0x1240   :  { %2351 = vmatmul.mubr.msk.f32.vlgmr.msra.gmra.mxu1 %vm172_vm1, %v1089_v54 }
0x1241   :  { %1430 = vmatpush1.msra.mxu1 %v2612_v9  ;;  %1477 = vmatprep.mubr.f32.mxu1 %v2518_v0 }
0x1242   :  { %1431 = vmatprep.subr.mxu1 %v2621_v11 }
0x1243   :  { %1432 = vmatpush1.msra.mxu1 %v2628_v13 }
0x1244   :  { %1433 = vmatprep.subr.mxu1 %v2632_v14 }
0x1245   :  { %1434 = vmatpush1.msra.mxu1 %v2640_v15 }
0x1246   :  { %1435 = vmatprep.subr.mxu1 %v2647_v17 }
0x1247   :  { %1436 = vmatpush1.msra.mxu1 %v2653_v18 }
0x1248   :  { %1437 = vmatprep.subr.mxu1 %v2657_v19 }
0x1249   :  { %1438 = vmatpush1.msra.mxu1 %v2661_v20 }
0x124a   :  { %1439 = vmatprep.subr.mxu1 %v2665_v21 }
0x124b   :  { %1440 = vmatpush1.msra.mxu1 %v2669_v22 }
0x124c   :  { %1441 = vmatprep.subr.mxu1 %v2673_v23 }
0x124d   :  { %1442 = vmatpush1.msra.mxu1 %v2677_v24 }
0x124e   :  { %1443 = vmatprep.subr.mxu1 %v2681_v25 }
0x124f   :  { %1444 = vmatpush1.msra.mxu1 %v2685_v26 }
0x1250   :  { %1661 = vmatprep.subr.mxu1 %v2604_v7  ;;  %v1172_v7 = vrot.slane %v2903_v48, 6 }
0x1300   :  { %v1158_v9 = vpop.f32.mrf.mxu1 }
0x1301   :  { %v1163_v15 = vadd.f32 %v1158_v9, %v2722_v33 }
0x1302   :  { %v1160_v11 = vpop.f32.mrf.mxu1 }
0x1303   :  { %v1164_v13 = vadd.f32 %v1160_v11, %v2724_v34 }
0x1305   :  { %2417 = vtanh.f32 %v1164_v13 }
0x1306   :  { %2419 = vtanh.f32 %v1163_v15 }
0x1312   :  { %v2418_v14 = vpop.eup %2417 }
0x1313   :  { %1176 = vrot.lane.b32.xlu1 %v2418_v14, %s2519_s3  ;;  %v2420_v17 = vpop.eup %2419  ;;  %v1168_v62 = vmul.f32 0.5, %v2418_v14 }
0x1314   :  { %v1167_v18 = vmul.f32 0.5, %v2420_v17 }
0x1315   :  { %v1170_v63 = vadd.f32 0.5, %v1168_v62 }
0x1316   :  { %v1169_v19 = vadd.f32 0.5, %v1167_v18 }
0x1318   :  { %v1174_v22 = vmul.f32 %v1172_v7, %v1169_v19 }
0x1385   :  { %v1177_v20 = vpop.permute.xlu1 %1176 }
0x1386   :  { %v1179_v21 = vmul.f32 %v1177_v20, %v1169_v19 }
0x1388   :  { %1181 = vrot.lane.b32.xlu0 %v1179_v21, %s2519_s3 }
0x138c   :  { %398 = vrot.lane.b32.xlu0 %v2768_v55, %s2520_s5 }
0x1390   :  { %630 = vrot.lane.b32.xlu0 %v2816_v32, %s2520_s5 }
0x1394   :  { %855 = vrot.lane.b32.xlu0 %v2864_v44, %s2520_s5 }
0x1398   :  { %1085 = vrot.lane.b32.xlu0 %v2907_v53, %s2520_s5 }
0x13fa   :  { %v1182_v57 = vpop.permute.xlu0 %1181 }
0x13fb   :  { %v1184_v58 = vadd.f32 %v1182_v57, %v1174_v22 }
0x13fd   :  { %2421 = vtanh.f32 %v1184_v58  ;;  %1197 = vrot.lane.b32.xlu0 %v1184_v58, %s2519_s3 }
0x13fe   :  { %v399_v59 = vpop.permute.xlu0 %398 }
0x13ff   :  { %402 = vst.msk [vmem:[#allocation3 - $0x2] sm:$0xc] %vm401_vm3, %v399_v59 }
0x1402   :  { %v631_v55 = vpop.permute.xlu0 %630 }
0x1403   :  { %634 = vst.msk [vmem:[#allocation3 - $0x2] sm:$0xc0] %vm633_vm4, %v631_v55 }
0x1406   :  { %v856_v32 = vpop.permute.xlu0 %855 }
0x1407   :  { %858 = vst.msk [vmem:[#allocation3 + $0x6] sm:$0xc] %vm401_vm3, %v856_v32 }
0x140a   :  { %v2422_v44 = vpop.eup %2421  ;;  %v1086_v60 = vpop.permute.xlu0 %1085 }
0x140b   :  { %1088 = vst.msk [vmem:[#allocation3 + $0x6] sm:$0xc0] %vm633_vm4, %v1086_v60  ;;  %1187 = vrot.lane.b32.xlu1 %v2422_v44, %s2519_s3 }
0x140f   :  { %514 = vrot.lane.b32.xlu1 %v2792_v43, %s2520_s5 }
0x1413   :  { %740 = vrot.lane.b32.xlu1 %v2840_v56, %s2520_s5 }
0x1417   :  { %970 = vrot.lane.b32.xlu1 %v2888_v35, %s2520_s5  ;;  %v2978_v35 = vld [vmem:[#allocation4 + $0x68] sm:$0xff] }
0x146f   :  { %v1198_v41 = vpop.permute.xlu0 %1197 }
0x147d   :  { %v1188_v12 = vpop.permute.xlu1 %1187 }
0x147e   :  { %v1190_v29 = vmul.f32 %v1188_v12, %v1170_v63 }
0x1480   :  { %v2965_v43 = vsel %vm2957_vm7, %v1190_v29, %v1089_v54 }
0x1481   :  { %v515_v56 = vpop.permute.xlu1 %514  ;;  %1205 = vrot.lane.b32.xlu1 %v2965_v43, %s2520_s5 }
0x1482   :  { %518 = vst.msk [vmem:[#allocation3 - $0x2] sm:$0x30] %vm517_vm8, %v515_v56 }
0x1485   :  { %v741_v30 = vpop.permute.xlu1 %740  ;;  %1200 = vrot.lane.b32.xlu1 %v1172_v7, %s2519_s3 }
0x1486   :  { %744 = vst.msk [vmem:[#allocation3 + $0x6] sm:$0x3] %vm743_vm9, %v741_v30 }
0x1489   :  { %v971_v31 = vpop.permute.xlu1 %970 }
0x148a   :  { %973 = vst.msk [vmem:[#allocation3 + $0x6] sm:$0x30] %vm517_vm8, %v971_v31 }
0x148d   :  { %v1209_v27 = vld [vmem:[#allocation3] sm:$0xff] }
0x148e   :  { %2352 = vmatmul.mubr.msk.f32.vlgmr.msra.gmra.mxu0 %vm82_vm0, %v1209_v27 }
0x148f   :  { %1319 = vmatpush1.msra.mxu0 %v2974_v28  ;;  %1287 = vmatprep.mubr.f32.mxu0 %v2518_v0 }
0x1490   :  { %1320 = vmatprep.subr.mxu0 %v2978_v35 }
0x1491   :  { %1321 = vmatpush1.msra.mxu0 %v2981_v1 }
0x1492   :  { %1322 = vmatprep.subr.mxu0 %v2984_v36 }
0x1493   :  { %1323 = vmatpush1.msra.mxu0 %v2987_v37 }
0x1494   :  { %1324 = vmatprep.subr.mxu0 %v2990_v38 }
0x1495   :  { %1325 = vmatpush1.msra.mxu0 %v2993_v2 }
0x1496   :  { %1326 = vmatprep.subr.mxu0 %v2996_v39 }
0x1497   :  { %1327 = vmatpush1.msra.mxu0 %v2999_v40 }
0x1498   :  { %1328 = vmatprep.subr.mxu0 %v3002_v3 }
0x1499   :  { %1329 = vmatpush1.msra.mxu0 %v3005_v4 }
0x149a   :  { %1330 = vmatprep.subr.mxu0 %v2673_v23 }
0x149b   :  { %1331 = vmatpush1.msra.mxu0 %v2677_v24  ;;  %v3038_v24 = vld [vmem:[#allocation4 + $0x18] sm:$0xff] }
0x149c   :  { %1332 = vmatprep.subr.mxu0 %v2681_v25  ;;  %v3041_v25 = vld [vmem:[#allocation4 + $0x10] sm:$0xff] }
0x149d   :  { %1333 = vmatpush1.msra.mxu0 %v2685_v26  ;;  %v3044_v26 = vld [vmem:[#allocation4 + $0x8] sm:$0xff] }
0x149e   :  { %1546 = vmatprep.subr.mxu0 %v3012_v5 }
0x14f3   :  { %v1206_v6 = vpop.permute.xlu1 %1205 }
0x14f4   :  { %1208 = vst.msk [vmem:[#allocation3 + $0xe] sm:$0x3] %vm743_vm9, %v1206_v6 }
0x14f7   :  { %v1201_v8 = vpop.permute.xlu1 %1200 }
0x14f8   :  { %v3018_v42 = vsel %vm2957_vm7, %v1198_v41, %v1201_v8 }
0x14f9   :  { %1382 = vrot.lane.b32.xlu1 %v3018_v42, %s2519_s3 }
0x14fb   :  { %v1210_v23 = vld [vmem:[#allocation3 + $0x8] sm:$0xff] }
0x14fc   :  { %2353 = vmatmul.mubr.msk.f32.gmra.mxu0 %vm82_vm0, %v1210_v23 }
0x14fd   :  { %1366 = vmatprep.mubr.f32.mxu0 %v2518_v0 }
0x1500   :  { %2354 = vmatmul.mubr.msk.f32.vlgmr.msra.gmra.mxu0 %vm172_vm1, %v2965_v43 }
0x1501   :  { %1547 = vmatpush1.msra.mxu0 %v2974_v28  ;;  %1594 = vmatprep.mubr.f32.mxu0 %v2518_v0 }
0x1502   :  { %1548 = vmatprep.subr.mxu0 %v2978_v35 }
0x1503   :  { %1549 = vmatpush1.msra.mxu0 %v2981_v1 }
0x1504   :  { %1550 = vmatprep.subr.mxu0 %v2984_v36 }
0x1505   :  { %1551 = vmatpush1.msra.mxu0 %v2987_v37 }
0x1506   :  { %1552 = vmatprep.subr.mxu0 %v2990_v38 }
0x1507   :  { %1553 = vmatpush1.msra.mxu0 %v2993_v2 }
0x1508   :  { %1554 = vmatprep.subr.mxu0 %v2996_v39 }
0x1509   :  { %1555 = vmatpush1.msra.mxu0 %v2999_v40 }
0x150a   :  { %1556 = vmatprep.subr.mxu0 %v3002_v3 }
0x150b   :  { %1557 = vmatpush1.msra.mxu0 %v3005_v4 }
0x150c   :  { %1558 = vmatprep.subr.mxu0 %v3038_v24 }
0x150d   :  { %1559 = vmatpush1.msra.mxu0 %v3041_v25 }
0x150e   :  { %1560 = vmatprep.subr.mxu0 %v3044_v26 }
0x150f   :  { %1561 = vmatpush1.msra.mxu0 %v3047_v10 }
0x1510   :  { %1776 = vmatprep.subr.mxu0 %v3012_v5 }
0x154e   :  { %v1283_v45 = vpop.f32.mrf.mxu0 }
0x154f   :  { %v1284_v46 = vadd.f32 %v1283_v45, %v2722_v33 }
0x1550   :  { %v1285_v47 = vpop.f32.mrf.mxu0 }
0x1551   :  { %1294 = vst [vmem:[#allocation2 + $0x10] sm:$0xff] %v1284_v46  ;;  %v1286_v48 = vadd.f32 %v1285_v47, %v2724_v34 }
0x1553   :  { %1295 = vst [vmem:[#allocation2] sm:$0xff] %v1286_v48 }
0x1558   :  { %v1298_v14 = vld [vmem:[#allocation2 + $0x10] sm:$0x3]  ;;  %v1408_v41 = vld [vmem:[#allocation2 + $0x10] sm:$0xc] }
0x155a   :  { %v1299_v54 = vld [vmem:[#allocation2] sm:$0x3]  ;;  %v1409_v30 = vld [vmem:[#allocation2] sm:$0xc] }
0x156b   :  { %v1383_v7 = vpop.permute.xlu1 %1382 }
0x15bc   :  { %v1289_v49 = vpop.f32.mrf.mxu0 }
0x15bd   :  { %v1290_v50 = vadd.f32 %v1289_v49, %v2722_v33 }
0x15be   :  { %v1291_v51 = vpop.f32.mrf.mxu0 }
0x15bf   :  { %1296 = vst [vmem:[#allocation2 + $0x18] sm:$0xff] %v1290_v50  ;;  %v1292_v52 = vadd.f32 %v1291_v51, %v2724_v34 }
0x15c0   :  { %v1368_v53 = vpop.f32.mrf.mxu0 }
0x15c1   :  { %1297 = vst [vmem:[#allocation2 + $0x8] sm:$0xff] %v1292_v52  ;;  %v1373_v15 = vadd.f32 %v1368_v53, %v1298_v14 }
0x15c2   :  { %v1370_v9 = vpop.f32.mrf.mxu0 }
0x15c3   :  { %v1374_v11 = vadd.f32 %v1370_v9, %v1299_v54 }
0x15c5   :  { %2423 = vtanh.f32 %v1374_v11 }
0x15c6   :  { %2425 = vtanh.f32 %v1373_v15 }
0x15d2   :  { %v2424_v13 = vpop.eup %2423 }
0x15d3   :  { %1387 = vrot.lane.b32.xlu0 %v2424_v13, %s2519_s3  ;;  %v2426_v17 = vpop.eup %2425  ;;  %v1378_v60 = vmul.f32 0.5, %v2424_v13 }
0x15d4   :  { %v1377_v18 = vmul.f32 0.5, %v2426_v17 }
0x15d5   :  { %v1380_v62 = vadd.f32 0.5, %v1378_v60 }
0x15d6   :  { %v1379_v19 = vadd.f32 0.5, %v1377_v18  ;;  %v1526_v18 = vld [vmem:[#allocation2] sm:$0x30] }
0x15d8   :  { %v1385_v22 = vmul.f32 %v1383_v7, %v1379_v19  ;;  %v1525_v7 = vld [vmem:[#allocation2 + $0x10] sm:$0x30] }
0x1645   :  { %v1388_v20 = vpop.permute.xlu0 %1387 }
0x1646   :  { %v1390_v21 = vmul.f32 %v1388_v20, %v1379_v19 }
0x1648   :  { %1392 = vrot.lane.b32.xlu0 %v1390_v21, %s2519_s3 }
0x16ba   :  { %v1393_v57 = vpop.permute.xlu0 %1392 }
0x16bb   :  { %v1395_v58 = vadd.f32 %v1393_v57, %v1385_v22 }
0x16bd   :  { %2427 = vtanh.f32 %v1395_v58  ;;  %1404 = vrot.lane.b32.xlu0 %v1395_v58, %s2519_s3 }
0x16ca   :  { %v2428_v59 = vpop.eup %2427 }
0x16cb   :  { %1398 = vrot.lane.b32.xlu1 %v2428_v59, %s2519_s3 }
0x172f   :  { %v1405_v55 = vpop.permute.xlu0 %1404 }
0x1730   :  { %v1407_v32 = vsel %vm277_vm2, %v1405_v55, %v3018_v42 }
0x1731   :  { %v1499_v44 = vrot.slane %v1407_v32, 6 }
0x1733   :  { %1500 = vrot.lane.b32.xlu0 %v1499_v44, %s2519_s3 }
0x173d   :  { %v1399_v63 = vpop.permute.xlu1 %1398 }
0x173e   :  { %v1401_v12 = vmul.f32 %v1399_v63, %v1380_v62 }
0x1740   :  { %v1402_v29 = vsel %vm277_vm2, %v1401_v12, %v2965_v43 }
0x1741   :  { %2355 = vmatmul.mubr.msk.f32.vlgmr.msra.gmra.mxu1 %vm172_vm1, %v1402_v29 }
0x1742   :  { %1662 = vmatpush1.msra.mxu1 %v2974_v28  ;;  %1709 = vmatprep.mubr.f32.mxu1 %v2518_v0 }
0x1743   :  { %1663 = vmatprep.subr.mxu1 %v2978_v35 }
0x1744   :  { %1664 = vmatpush1.msra.mxu1 %v2981_v1 }
0x1745   :  { %1665 = vmatprep.subr.mxu1 %v2984_v36 }
0x1746   :  { %1666 = vmatpush1.msra.mxu1 %v2987_v37 }
0x1747   :  { %1667 = vmatprep.subr.mxu1 %v2990_v38 }
0x1748   :  { %1668 = vmatpush1.msra.mxu1 %v2993_v2 }
0x1749   :  { %1669 = vmatprep.subr.mxu1 %v2996_v39 }
0x174a   :  { %1670 = vmatpush1.msra.mxu1 %v2999_v40 }
0x174b   :  { %1671 = vmatprep.subr.mxu1 %v3002_v3 }
0x174c   :  { %1672 = vmatpush1.msra.mxu1 %v3005_v4 }
0x174d   :  { %1673 = vmatprep.subr.mxu1 %v3038_v24 }
0x174e   :  { %1674 = vmatpush1.msra.mxu1 %v3041_v25 }
0x174f   :  { %1675 = vmatprep.subr.mxu1 %v3044_v26 }
0x1750   :  { %1676 = vmatpush1.msra.mxu1 %v3047_v10 }
0x1751   :  { %1884 = vmatprep.subr.mxu1 %v3012_v5 }
0x17a5   :  { %v1501_v48 = vpop.permute.xlu0 %1500 }
0x1801   :  { %v1479_v61 = vpop.f32.mrf.mxu1 }
0x1802   :  { %v1486_v6 = vrot.slane %v1479_v61, 6 }
0x1803   :  { %v1481_v43 = vpop.f32.mrf.mxu1 }
0x1804   :  { %v1487_v56 = vrot.slane %v1481_v43, 6  ;;  %v1490_v8 = vadd.f32 %v1486_v6, %v1408_v41  ;;  %v1641_v41 = vld [vmem:[#allocation2] sm:$0xc0] }
0x1806   :  { %v1491_v31 = vadd.f32 %v1487_v56, %v1409_v30 }
0x1808   :  { %2429 = vtanh.f32 %v1491_v31 }
0x1809   :  { %2431 = vtanh.f32 %v1490_v8 }
0x1815   :  { %v2430_v27 = vpop.eup %2429 }
0x1816   :  { %1505 = vrot.lane.b32.xlu1 %v2430_v27, %s2519_s3  ;;  %v2432_v42 = vpop.eup %2431  ;;  %v1495_v53 = vmul.f32 0.5, %v2430_v27 }
0x1817   :  { %v1494_v23 = vmul.f32 0.5, %v2432_v42 }
0x1818   :  { %v1497_v54 = vadd.f32 0.5, %v1495_v53 }
0x1819   :  { %v1496_v45 = vadd.f32 0.5, %v1494_v23 }
0x181b   :  { %v1503_v49 = vmul.f32 %v1501_v48, %v1496_v45 }
0x1888   :  { %v1506_v46 = vpop.permute.xlu1 %1505 }
0x1889   :  { %v1508_v47 = vmul.f32 %v1506_v46, %v1496_v45  ;;  %v1640_v45 = vld [vmem:[#allocation2 + $0x10] sm:$0xc0] }
0x188b   :  { %1510 = vrot.lane.b32.xlu1 %v1508_v47, %s2519_s3 }
0x18fd   :  { %v1511_v50 = vpop.permute.xlu1 %1510 }
0x18fe   :  { %v1513_v51 = vadd.f32 %v1511_v50, %v1503_v49 }
0x1900   :  { %2433 = vtanh.f32 %v1513_v51  ;;  %v1616_v44 = vrot.slane %v1513_v51, 6 }
0x190d   :  { %v2434_v52 = vpop.eup %2433 }
0x190e   :  { %1516 = vrot.lane.b32.xlu0 %v2434_v52, %s2519_s3 }
0x1980   :  { %v1517_v9 = vpop.permute.xlu0 %1516 }
0x1981   :  { %v3087_v11 = vmul.f32 %v1517_v9, %v1497_v54 }
0x1983   :  { %v1527_v13 = vrot.slane %v3087_v11, 2 }
0x1985   :  { %2356 = vmatmul.mubr.msk.f32.vlgmr.msra.gmra.mxu0 %vm172_vm1, %v1527_v13 }
0x1986   :  { %1777 = vmatpush1.msra.mxu0 %v2974_v28  ;;  %1824 = vmatprep.mubr.f32.mxu0 %v2518_v0 }
0x1987   :  { %1778 = vmatprep.subr.mxu0 %v2978_v35 }
0x1988   :  { %1779 = vmatpush1.msra.mxu0 %v2981_v1 }
0x1989   :  { %1780 = vmatprep.subr.mxu0 %v2984_v36 }
0x198a   :  { %1781 = vmatpush1.msra.mxu0 %v2987_v37 }
0x198b   :  { %1782 = vmatprep.subr.mxu0 %v2990_v38 }
0x198c   :  { %1783 = vmatpush1.msra.mxu0 %v2993_v2 }
0x198d   :  { %1784 = vmatprep.subr.mxu0 %v2996_v39 }
0x198e   :  { %1785 = vmatpush1.msra.mxu0 %v2999_v40 }
0x198f   :  { %1786 = vmatprep.subr.mxu0 %v3002_v3 }
0x1990   :  { %1787 = vmatpush1.msra.mxu0 %v3005_v4 }
0x1991   :  { %1788 = vmatprep.subr.mxu0 %v3038_v24 }
0x1992   :  { %1789 = vmatpush1.msra.mxu0 %v3041_v25 }
0x1993   :  { %1790 = vmatprep.subr.mxu0 %v3044_v26 }
0x1994   :  { %1791 = vmatpush1.msra.mxu0 %v3047_v10 }
0x1995   :  { %1999 = vmatprep.subr.mxu0 %v3012_v5 }
0x1a45   :  { %v1596_v14 = vpop.f32.mrf.mxu0 }
0x1a46   :  { %v1603_v21 = vrot.slane %v1596_v14, 4 }
0x1a47   :  { %v1598_v15 = vpop.f32.mrf.mxu0 }
0x1a48   :  { %v1604_v17 = vrot.slane %v1598_v15, 4  ;;  %v1607_v22 = vadd.f32 %v1603_v21, %v1525_v7  ;;  %v1756_v21 = vld [vmem:[#allocation2 + $0x8] sm:$0x3] }
0x1a4a   :  { %v1608_v19 = vadd.f32 %v1604_v17, %v1526_v18 }
0x1a4c   :  { %2435 = vtanh.f32 %v1608_v19 }
0x1a4d   :  { %2437 = vtanh.f32 %v1607_v22 }
0x1a59   :  { %v2436_v20 = vpop.eup %2435 }
0x1a5a   :  { %1620 = vrot.lane.b32.xlu1 %v2436_v20, %s2519_s3  ;;  %v2438_v57 = vpop.eup %2437  ;;  %v1612_v29 = vmul.f32 0.5, %v2436_v20 }
0x1a5b   :  { %v1611_v58 = vmul.f32 0.5, %v2438_v57 }
0x1a5c   :  { %v1614_v61 = vadd.f32 0.5, %v1612_v29 }
0x1a5d   :  { %v1613_v59 = vadd.f32 0.5, %v1611_v58  ;;  %v1755_v58 = vld [vmem:[#allocation2 + $0x18] sm:$0x3] }
0x1a5f   :  { %v1618_v60 = vmul.f32 %v1616_v44, %v1613_v59 }
0x1acc   :  { %v1621_v55 = vpop.permute.xlu1 %1620 }
0x1acd   :  { %v1623_v32 = vmul.f32 %v1621_v55, %v1613_v59 }
0x1acf   :  { %1625 = vrot.lane.b32.xlu0 %v1623_v32, %s2519_s3 }
0x1b41   :  { %v1626_v62 = vpop.permute.xlu0 %1625 }
0x1b42   :  { %v1628_v63 = vadd.f32 %v1626_v62, %v1618_v60 }
0x1b44   :  { %2439 = vtanh.f32 %v1628_v63  ;;  %v1731_v52 = vrot.slane %v1628_v63, 6 }
0x1b51   :  { %v2440_v12 = vpop.eup %2439 }
0x1b52   :  { %1631 = vrot.lane.b32.xlu1 %v2440_v12, %s2519_s3 }
0x1bc4   :  { %v1632_v43 = vpop.permute.xlu1 %1631 }
0x1bc5   :  { %v3111_v56 = vmul.f32 %v1632_v43, %v1614_v61 }
0x1bc7   :  { %v1642_v30 = vrot.slane %v3111_v56, 4 }
0x1bc9   :  { %2357 = vmatmul.mubr.msk.f32.vlgmr.msra.gmra.mxu1 %vm172_vm1, %v1642_v30 }
0x1bca   :  { %1885 = vmatpush1.msra.mxu1 %v2974_v28  ;;  %1932 = vmatprep.mubr.f32.mxu1 %v2518_v0 }
0x1bcb   :  { %1886 = vmatprep.subr.mxu1 %v2978_v35 }
0x1bcc   :  { %1887 = vmatpush1.msra.mxu1 %v2981_v1 }
0x1bcd   :  { %1888 = vmatprep.subr.mxu1 %v2984_v36 }
0x1bce   :  { %1889 = vmatpush1.msra.mxu1 %v2987_v37 }
0x1bcf   :  { %1890 = vmatprep.subr.mxu1 %v2990_v38 }
0x1bd0   :  { %1891 = vmatpush1.msra.mxu1 %v2993_v2 }
0x1bd1   :  { %1892 = vmatprep.subr.mxu1 %v2996_v39 }
0x1bd2   :  { %1893 = vmatpush1.msra.mxu1 %v2999_v40 }
0x1bd3   :  { %1894 = vmatprep.subr.mxu1 %v3002_v3 }
0x1bd4   :  { %1895 = vmatpush1.msra.mxu1 %v3005_v4 }
0x1bd5   :  { %1896 = vmatprep.subr.mxu1 %v3038_v24 }
0x1bd6   :  { %1897 = vmatpush1.msra.mxu1 %v3041_v25 }
0x1bd7   :  { %1898 = vmatprep.subr.mxu1 %v3044_v26 }
0x1bd8   :  { %1899 = vmatpush1.msra.mxu1 %v3047_v10 }
0x1bd9   :  { %2114 = vmatprep.subr.mxu1 %v3012_v5 }
0x1c89   :  { %v1711_v31 = vpop.f32.mrf.mxu1 }
0x1c8a   :  { %v1718_v23 = vrot.slane %v1711_v31, 2 }
0x1c8b   :  { %v1713_v27 = vpop.f32.mrf.mxu1 }
0x1c8c   :  { %v1719_v6 = vrot.slane %v1713_v27, 2  ;;  %v1722_v46 = vadd.f32 %v1718_v23, %v1640_v45 }
0x1c8e   :  { %v1723_v8 = vadd.f32 %v1719_v6, %v1641_v41 }
0x1c90   :  { %2441 = vtanh.f32 %v1723_v8 }
0x1c91   :  { %2443 = vtanh.f32 %v1722_v46 }
0x1c9d   :  { %v2442_v42 = vpop.eup %2441 }
0x1c9e   :  { %1735 = vrot.lane.b32.xlu0 %v2442_v42, %s2519_s3  ;;  %v2444_v47 = vpop.eup %2443  ;;  %v1727_v14 = vmul.f32 0.5, %v2442_v42  ;;  %v1865_v42 = vld [vmem:[#allocation2 + $0x8] sm:$0xc] }
0x1c9f   :  { %v1726_v48 = vmul.f32 0.5, %v2444_v47  ;;  %v1864_v47 = vld [vmem:[#allocation2 + $0x18] sm:$0xc] }
0x1ca0   :  { %v1729_v15 = vadd.f32 0.5, %v1727_v14 }
0x1ca1   :  { %v1728_v49 = vadd.f32 0.5, %v1726_v48 }
0x1ca3   :  { %v1733_v53 = vmul.f32 %v1731_v52, %v1728_v49 }
0x1d10   :  { %v1736_v50 = vpop.permute.xlu0 %1735 }
0x1d11   :  { %v1738_v51 = vmul.f32 %v1736_v50, %v1728_v49 }
0x1d13   :  { %1740 = vrot.lane.b32.xlu1 %v1738_v51, %s2519_s3 }
0x1d85   :  { %v1741_v54 = vpop.permute.xlu1 %1740 }
0x1d86   :  { %v1743_v9 = vadd.f32 %v1741_v54, %v1733_v53 }
0x1d88   :  { %2445 = vtanh.f32 %v1743_v9  ;;  %v1840_v63 = vrot.slane %v1743_v9, 6 }
0x1d95   :  { %v2446_v13 = vpop.eup %2445 }
0x1d96   :  { %1746 = vrot.lane.b32.xlu0 %v2446_v13, %s2519_s3 }
0x1e08   :  { %v1747_v17 = vpop.permute.xlu0 %1746 }
0x1e09   :  { %v3135_v18 = vmul.f32 %v1747_v17, %v1729_v15 }
0x1e0b   :  { %v1757_v19 = vrot.slane %v3135_v18, 6 }
0x1e0d   :  { %2358 = vmatmul.mubr.msk.f32.vlgmr.msra.gmra.mxu0 %vm172_vm1, %v1757_v19 }
0x1e0e   :  { %2000 = vmatpush1.msra.mxu0 %v2974_v28  ;;  %2047 = vmatprep.mubr.f32.mxu0 %v2518_v0 }
0x1e0f   :  { %2001 = vmatprep.subr.mxu0 %v2978_v35 }
0x1e10   :  { %2002 = vmatpush1.msra.mxu0 %v2981_v1 }
0x1e11   :  { %2003 = vmatprep.subr.mxu0 %v2984_v36 }
0x1e12   :  { %2004 = vmatpush1.msra.mxu0 %v2987_v37 }
0x1e13   :  { %2005 = vmatprep.subr.mxu0 %v2990_v38 }
0x1e14   :  { %2006 = vmatpush1.msra.mxu0 %v2993_v2 }
0x1e15   :  { %2007 = vmatprep.subr.mxu0 %v2996_v39 }
0x1e16   :  { %2008 = vmatpush1.msra.mxu0 %v2999_v40 }
0x1e17   :  { %2009 = vmatprep.subr.mxu0 %v3002_v3 }
0x1e18   :  { %2010 = vmatpush1.msra.mxu0 %v3005_v4 }
0x1e19   :  { %2011 = vmatprep.subr.mxu0 %v3038_v24 }
0x1e1a   :  { %2012 = vmatpush1.msra.mxu0 %v3041_v25 }
0x1e1b   :  { %2013 = vmatprep.subr.mxu0 %v3044_v26 }
0x1e1c   :  { %2014 = vmatpush1.msra.mxu0 %v3047_v10 }
0x1e1d   :  { %2227 = vmatprep.subr.mxu0 %v3012_v5 }
0x1ecd   :  { %v1826_v20 = vpop.f32.mrf.mxu0 }
0x1ece   :  { %v1831_v59 = vadd.f32 %v1826_v20, %v1755_v58 }
0x1ecf   :  { %v1828_v7 = vpop.f32.mrf.mxu0 }
0x1ed0   :  { %v1832_v22 = vadd.f32 %v1828_v7, %v1756_v21 }
0x1ed2   :  { %2447 = vtanh.f32 %v1832_v22 }
0x1ed3   :  { %2449 = vtanh.f32 %v1831_v59 }
0x1edf   :  { %v2448_v57 = vpop.eup %2447 }
0x1ee0   :  { %1844 = vrot.lane.b32.xlu1 %v2448_v57, %s2519_s3  ;;  %v2450_v55 = vpop.eup %2449  ;;  %v1836_v43 = vmul.f32 0.5, %v2448_v57 }
0x1ee1   :  { %v1835_v32 = vmul.f32 0.5, %v2450_v55 }
0x1ee2   :  { %v1838_v30 = vadd.f32 0.5, %v1836_v43 }
0x1ee3   :  { %v1837_v44 = vadd.f32 0.5, %v1835_v32 }
0x1ee5   :  { %v1842_v5 = vmul.f32 %v1840_v63, %v1837_v44 }
0x1f52   :  { %v1845_v60 = vpop.permute.xlu1 %1844 }
0x1f53   :  { %v1847_v62 = vmul.f32 %v1845_v60, %v1837_v44 }
0x1f55   :  { %1849 = vrot.lane.b32.xlu0 %v1847_v62, %s2519_s3 }
0x1fc7   :  { %v1850_v12 = vpop.permute.xlu0 %1849 }
0x1fc8   :  { %v1852_v29 = vadd.f32 %v1850_v12, %v1842_v5  ;;  %v2094_v12 = vld [vmem:[#allocation2 + $0x8] sm:$0xc0] }
0x1fca   :  { %2451 = vtanh.f32 %v1852_v29  ;;  %v1954_v54 = vrot.slane %v1852_v29, 6 }
0x1fd7   :  { %v2452_v61 = vpop.eup %2451 }
0x1fd8   :  { %1855 = vrot.lane.b32.xlu1 %v2452_v61, %s2519_s3 }
0x204a   :  { %v1856_v31 = vpop.permute.xlu1 %1855 }
0x204b   :  { %v3159_v27 = vmul.f32 %v1856_v31, %v1838_v30  ;;  %v2093_v30 = vld [vmem:[#allocation2 + $0x18] sm:$0xc0] }
0x204d   :  { %2359 = vmatmul.mubr.msk.f32.vlgmr.msra.gmra.mxu1 %vm172_vm1, %v3159_v27 }
0x204e   :  { %2115 = vmatpush1.msra.mxu1 %v2974_v28  ;;  %2162 = vmatprep.mubr.f32.mxu1 %v2518_v0 }
0x204f   :  { %2116 = vmatprep.subr.mxu1 %v2978_v35 }
0x2050   :  { %2117 = vmatpush1.msra.mxu1 %v2981_v1 }
0x2051   :  { %2118 = vmatprep.subr.mxu1 %v2984_v36 }
0x2052   :  { %2119 = vmatpush1.msra.mxu1 %v2987_v37 }
0x2053   :  { %2120 = vmatprep.subr.mxu1 %v2990_v38 }
0x2054   :  { %2121 = vmatpush1.msra.mxu1 %v2993_v2 }
0x2055   :  { %2122 = vmatprep.subr.mxu1 %v2996_v39 }
0x2056   :  { %2123 = vmatpush1.msra.mxu1 %v2999_v40 }
0x2057   :  { %2124 = vmatprep.subr.mxu1 %v3002_v3 }
0x2058   :  { %2125 = vmatpush1.msra.mxu1 %v3005_v4 }
0x2059   :  { %2126 = vmatprep.subr.mxu1 %v3038_v24 }
0x205a   :  { %2127 = vmatpush1.msra.mxu1 %v3041_v25 }
0x205b   :  { %2128 = vmatprep.subr.mxu1 %v3044_v26 }
0x205c   :  { %2129 = vmatpush1.msra.mxu1 %v3047_v10 }
0x210d   :  { %v1934_v6 = vpop.f32.mrf.mxu1 }
0x210e   :  { %v1941_v46 = vrot.slane %v1934_v6, 6 }
0x210f   :  { %v1936_v41 = vpop.f32.mrf.mxu1 }
0x2110   :  { %v1942_v8 = vrot.slane %v1936_v41, 6  ;;  %v1945_v48 = vadd.f32 %v1941_v46, %v1864_v47 }
0x2112   :  { %v1946_v23 = vadd.f32 %v1942_v8, %v1865_v42 }
0x2114   :  { %2453 = vtanh.f32 %v1946_v23 }
0x2115   :  { %2455 = vtanh.f32 %v1945_v48 }
0x2121   :  { %v2454_v45 = vpop.eup %2453 }
0x2122   :  { %1958 = vrot.lane.b32.xlu0 %v2454_v45, %s2519_s3  ;;  %v2456_v49 = vpop.eup %2455  ;;  %v1950_v17 = vmul.f32 0.5, %v2454_v45 }
0x2123   :  { %v1949_v50 = vmul.f32 0.5, %v2456_v49 }
0x2124   :  { %v1952_v19 = vadd.f32 0.5, %v1950_v17 }
0x2125   :  { %v1951_v51 = vadd.f32 0.5, %v1949_v50 }
0x2127   :  { %v1956_v9 = vmul.f32 %v1954_v54, %v1951_v51 }
0x2194   :  { %v1959_v52 = vpop.permute.xlu0 %1958 }
0x2195   :  { %v1961_v53 = vmul.f32 %v1959_v52, %v1951_v51 }
0x2197   :  { %1963 = vrot.lane.b32.xlu1 %v1961_v53, %s2519_s3 }
0x2209   :  { %v1964_v13 = vpop.permute.xlu1 %1963 }
0x220a   :  { %v1966_v14 = vadd.f32 %v1964_v13, %v1956_v9 }
0x220c   :  { %2457 = vtanh.f32 %v1966_v14 }
0x2219   :  { %v2458_v15 = vpop.eup %2457 }
0x221a   :  { %1969 = vrot.lane.b32.xlu0 %v2458_v15, %s2519_s3 }
0x228c   :  { %v1970_v20 = vpop.permute.xlu0 %1969 }
0x228d   :  { %v3182_v21 = vmul.f32 %v1970_v20, %v1952_v19 }
0x228f   :  { %v1980_v7 = vrot.slane %v3182_v21, 2 }
0x2291   :  { %2360 = vmatmul.mubr.msk.f32.vlgmr.msra.gmra.mxu0 %vm172_vm1, %v1980_v7 }
0x2292   :  { %2228 = vmatpush1.msra.mxu0 %v2974_v28  ;;  %2275 = vmatprep.mubr.f32.mxu0 %v2518_v0 }
0x2293   :  { %2229 = vmatprep.subr.mxu0 %v2978_v35 }
0x2294   :  { %2230 = vmatpush1.msra.mxu0 %v2981_v1  ;;  %v1979_v1 = vld [vmem:[#allocation2 + $0x8] sm:$0x30] }
0x2295   :  { %2231 = vmatprep.subr.mxu0 %v2984_v36 }
0x2296   :  { %2232 = vmatpush1.msra.mxu0 %v2987_v37 }
0x2297   :  { %2233 = vmatprep.subr.mxu0 %v2990_v38 }
0x2298   :  { %2234 = vmatpush1.msra.mxu0 %v2993_v2  ;;  %v1978_v2 = vld [vmem:[#allocation2 + $0x18] sm:$0x30] }
0x2299   :  { %2235 = vmatprep.subr.mxu0 %v2996_v39 }
0x229a   :  { %2236 = vmatpush1.msra.mxu0 %v2999_v40 }
0x229b   :  { %2237 = vmatprep.subr.mxu0 %v3002_v3 }
0x229c   :  { %2238 = vmatpush1.msra.mxu0 %v3005_v4 }
0x229d   :  { %2239 = vmatprep.subr.mxu0 %v3038_v24 }
0x229e   :  { %2240 = vmatpush1.msra.mxu0 %v3041_v25 }
0x229f   :  { %2241 = vmatprep.subr.mxu0 %v3044_v26  ;;  %v2069_v26 = vrot.slane %v1966_v14, 6 }
0x22a0   :  { %2242 = vmatpush1.msra.mxu0 %v3047_v10 }
0x2351   :  { %v2049_v0 = vpop.f32.mrf.mxu0 }
0x2352   :  { %v2056_v38 = vrot.slane %v2049_v0, 4 }
0x2353   :  { %v2051_v28 = vpop.f32.mrf.mxu0 }
0x2354   :  { %v2057_v35 = vrot.slane %v2051_v28, 4  ;;  %v2060_v39 = vadd.f32 %v2056_v38, %v1978_v2 }
0x2356   :  { %v2061_v36 = vadd.f32 %v2057_v35, %v1979_v1 }
0x2358   :  { %2459 = vtanh.f32 %v2061_v36 }
0x2359   :  { %2461 = vtanh.f32 %v2060_v39 }
0x2365   :  { %v2460_v37 = vpop.eup %2459 }
0x2366   :  { %2073 = vrot.lane.b32.xlu1 %v2460_v37, %s2519_s3  ;;  %v2462_v40 = vpop.eup %2461  ;;  %v2065_v59 = vmul.f32 0.5, %v2460_v37 }
0x2367   :  { %v2064_v3 = vmul.f32 0.5, %v2462_v40 }
0x2368   :  { %v2067_v55 = vadd.f32 0.5, %v2065_v59 }
0x2369   :  { %v2066_v4 = vadd.f32 0.5, %v2064_v3 }
0x236b   :  { %v2071_v10 = vmul.f32 %v2069_v26, %v2066_v4 }
0x23d8   :  { %v2074_v24 = vpop.permute.xlu1 %2073 }
0x23d9   :  { %v2076_v25 = vmul.f32 %v2074_v24, %v2066_v4 }
0x23db   :  { %2078 = vrot.lane.b32.xlu0 %v2076_v25, %s2519_s3 }
0x244d   :  { %v2079_v22 = vpop.permute.xlu0 %2078 }
0x244e   :  { %v2081_v57 = vadd.f32 %v2079_v22, %v2071_v10 }
0x2450   :  { %2463 = vtanh.f32 %v2081_v57  ;;  %v2184_v45 = vrot.slane %v2081_v57, 6 }
0x245d   :  { %v2464_v58 = vpop.eup %2463 }
0x245e   :  { %2084 = vrot.lane.b32.xlu1 %v2464_v58, %s2519_s3 }
0x24d0   :  { %v2085_v32 = vpop.permute.xlu1 %2084 }
0x24d1   :  { %v2087_v44 = vmul.f32 %v2085_v32, %v2067_v55 }
0x24d3   :  { %v2095_v60 = vrot.slane %v2087_v44, 4 }
0x24d5   :  { %2361 = vmatmul.mubr.msk.f32.vlgmr.msra.gmra.mxu1 %vm172_vm1, %v2095_v60 }
0x2595   :  { %v2164_v62 = vpop.f32.mrf.mxu1 }
0x2596   :  { %v2171_v43 = vrot.slane %v2164_v62, 2 }
0x2597   :  { %v2166_v63 = vpop.f32.mrf.mxu1 }
0x2598   :  { %v2172_v5 = vrot.slane %v2166_v63, 2  ;;  %v2175_v31 = vadd.f32 %v2171_v43, %v2093_v30 }
0x259a   :  { %v2176_v29 = vadd.f32 %v2172_v5, %v2094_v12 }
0x259c   :  { %2465 = vtanh.f32 %v2176_v29 }
0x259d   :  { %2467 = vtanh.f32 %v2175_v31 }
0x25a9   :  { %v2466_v61 = vpop.eup %2465 }
0x25aa   :  { %2188 = vrot.lane.b32.xlu0 %v2466_v61, %s2519_s3  ;;  %v2468_v6 = vpop.eup %2467  ;;  %v2180_v50 = vmul.f32 0.5, %v2466_v61 }
0x25ab   :  { %v2179_v41 = vmul.f32 0.5, %v2468_v6 }
0x25ac   :  { %v2182_v51 = vadd.f32 0.5, %v2180_v50 }
0x25ad   :  { %v2181_v8 = vadd.f32 0.5, %v2179_v41 }
0x25af   :  { %v2186_v46 = vmul.f32 %v2184_v45, %v2181_v8 }
0x261c   :  { %v2189_v42 = vpop.permute.xlu0 %2188 }
0x261d   :  { %v2191_v23 = vmul.f32 %v2189_v42, %v2181_v8 }
0x261f   :  { %2193 = vrot.lane.b32.xlu1 %v2191_v23, %s2519_s3 }
0x2691   :  { %v2194_v47 = vpop.permute.xlu1 %2193 }
0x2692   :  { %v2196_v48 = vadd.f32 %v2194_v47, %v2186_v46 }
0x2694   :  { %2469 = vtanh.f32 %v2196_v48  ;;  %v2291_v35 = vrot.slane %v2196_v48, 6 }
0x26a1   :  { %v2470_v49 = vpop.eup %2469 }
0x26a2   :  { %2199 = vrot.lane.b32.xlu0 %v2470_v49, %s2519_s3 }
0x2714   :  { %v2200_v52 = vpop.permute.xlu0 %2199 }
0x2715   :  { %v2202_v53 = vmul.f32 %v2200_v52, %v2182_v51 }
0x2717   :  { %v2208_v54 = vrot.slane %v2202_v53, 6 }
0x2719   :  { %2362 = vmatmul.mubr.msk.f32.vlgmr.msra.gmra.mxu0 %vm172_vm1, %v2208_v54 }
0x27d9   :  { %v2277_v9 = vpop.f32.mrf.mxu0 }
0x27da   :  { %v2282_v17 = vadd.f32 %v2277_v9, %v2722_v33 }
0x27db   :  { %v2279_v13 = vpop.f32.mrf.mxu0 }
0x27dc   :  { %v2283_v14 = vadd.f32 %v2279_v13, %v2724_v34 }
0x27de   :  { %2471 = vtanh.f32 %v2283_v14 }
0x27df   :  { %2473 = vtanh.f32 %v2282_v17 }
0x27eb   :  { %v2472_v15 = vpop.eup %2471 }
0x27ec   :  { %2295 = vrot.lane.b32.xlu1 %v2472_v15, %s2519_s3  ;;  %v2474_v19 = vpop.eup %2473 }
0x27ed   :  { %v2286_v20 = vmul.f32 0.5, %v2474_v19 }
0x27ef   :  { %v2288_v7 = vadd.f32 0.5, %v2286_v20 }
0x27f1   :  { %v2293_v1 = vmul.f32 %v2291_v35, %v2288_v7 }
0x285e   :  { %v2296_v0 = vpop.permute.xlu1 %2295 }
0x285f   :  { %v2298_v28 = vmul.f32 %v2296_v0, %v2288_v7 }
0x2861   :  { %2300 = vrot.lane.b32.xlu0 %v2298_v28, %s2519_s3 }
0x28d3   :  { %v2301_v36 = vpop.permute.xlu0 %2300 }
0x28d4   :  { %v2303_v37 = vadd.f32 %v2301_v36, %v2293_v1 }
0x28d6   :  { %2475 = vtanh.f32 %v2303_v37  ;;  %2313 = vrot.lane.b32.xlu0 %v2303_v37, %s2519_s3 }
0x28da   :  { %1521 = vrot.lane.b32.xlu0 %v3087_v11, %s2520_s5 }
0x28de   :  { %1751 = vrot.lane.b32.xlu0 %v3135_v18, %s2520_s5 }
0x28e2   :  { %1974 = vrot.lane.b32.xlu0 %v3182_v21, %s2520_s5  ;;  %v2287_v21 = vmul.f32 0.5, %v2472_v15 }
0x28e3   :  { %v2476_v33 = vpop.eup %2475 }
0x28e4   :  { %2306 = vrot.lane.b32.xlu1 %v2476_v33, %s2519_s3 }
0x28e6   :  { %2204 = vrot.lane.b32.xlu0 %v2202_v53, %s2520_s5 }
0x28e8   :  { %2316 = vrot.lane.b32.xlu1 %v2291_v35, %s2519_s3 }
0x28ec   :  { %1636 = vrot.lane.b32.xlu1 %v3111_v56, %s2520_s5 }
0x28f0   :  { %1860 = vrot.lane.b32.xlu1 %v3159_v27, %s2520_s5  ;;  %v2289_v27 = vadd.f32 0.5, %v2287_v21 }
0x28f4   :  { %2089 = vrot.lane.b32.xlu1 %v2087_v44, %s2520_s5 }
0x2948   :  { %v2314_v34 = vpop.permute.xlu0 %2313 }
0x294c   :  { %v1522_v11 = vpop.permute.xlu0 %1521 }
0x294d   :  { %1524 = vst.msk [vmem:[%s3278_s6 - $0x2] sm:$0xc] %vm401_vm3, %v1522_v11 }
0x2950   :  { %v1752_v18 = vpop.permute.xlu0 %1751 }
0x2951   :  { %1754 = vst.msk [vmem:[%s3278_s6 - $0x2] sm:$0xc0] %vm633_vm4, %v1752_v18 }
0x2954   :  { %v1975_v56 = vpop.permute.xlu0 %1974 }
0x2955   :  { %1977 = vst.msk [vmem:[%s3278_s6 + $0x6] sm:$0xc] %vm401_vm3, %v1975_v56 }
0x2956   :  { %v2307_v38 = vpop.permute.xlu1 %2306 }
0x2957   :  { %v2309_v2 = vmul.f32 %v2307_v38, %v2289_v27 }
0x2958   :  { %v2205_v39 = vpop.permute.xlu0 %2204 }
0x2959   :  { %2207 = vst.msk [vmem:[%s3278_s6 + $0x6] sm:$0xc0] %vm633_vm4, %v2205_v39  ;;  %v2311_v40 = vsel %vm2957_vm7, %v2309_v2, %v2208_v54 }
0x295a   :  { %v2317_v3 = vpop.permute.xlu1 %2316  ;;  %2321 = vrot.lane.b32.xlu1 %v2311_v40, %s2520_s5  ;;  %2326 = vst.msk [vmem:[%s3279_s7] sm:$0x3] %vm2325_vm10, %v2311_v40 }
0x295b   :  { %v2319_v4 = vsel %vm2957_vm7, %v2314_v34, %v2317_v3 }
0x295c   :  { %2327 = vst.msk [vmem:[%s3280_s8] sm:$0x3] %vm2325_vm10, %v2319_v4 }
0x295e   :  { %v1637_v24 = vpop.permute.xlu1 %1636 }
0x295f   :  { %1639 = vst.msk [vmem:[%s3278_s6 - $0x2] sm:$0x30] %vm517_vm8, %v1637_v24 }
0x2962   :  { %v1861_v25 = vpop.permute.xlu1 %1860 }
0x2963   :  { %1863 = vst.msk [vmem:[%s3278_s6 + $0x6] sm:$0x3] %vm743_vm9, %v1861_v25 }
0x2966   :  { %v2090_v26 = vpop.permute.xlu1 %2089 }
0x2967   :  { %2092 = vst.msk [vmem:[%s3278_s6 + $0x6] sm:$0x30] %vm517_vm8, %v2090_v26 }
0x29cc   :  { %v2322_v16 = vpop.permute.xlu1 %2321 }
0x29cd   :  { %2324 = vst.msk [vmem:[%s3278_s6 + $0xe] sm:$0x3] %vm743_vm9, %v2322_v16 }
0x29ce   :  { %2340 = vsyncpa [#allocation5], 1 }

</bundles_post_ra>
